<compile_context>
chip_gen: v6e
topology: v6e:2x2x1
jax: 0.10.0
libtpu: 0.0.40
codegen_flags: <defaults>
</compile_context>

<pallas_src>
import jax
import jax.numpy as jnp
from jax.experimental import pallas as pl
from jax.experimental.pallas import tpu as pltpu


def _round_up(a, b):
    return pl.cdiv(a, b) * b


_MAX_TM = 512  # batch-tile cap: z tile = 512*2048*4B = 4 MiB (x2 buffers)


def _pick_tile(batch):
    tm = min(_MAX_TM, _round_up(batch, 16))        # 16-multiple: bf16 (16,128) packing
    # v7x has 2 TensorCores: for batches big enough to matter, make sure the
    # "parallel" batch axis has at least two grid steps so it can shard.
    if tm >= 256 and pl.cdiv(batch, tm) < 2:
        tm = _round_up(pl.cdiv(batch, 2), 16)
    return tm


# -----------------------------------------------------------------------------
# Fused Discriminator kernel (one batch tile):
#   sigmoid( PReLU( PReLU(z @ W1 + b1) @ W2 + b2 ) @ w3 + b3 )
# -----------------------------------------------------------------------------
def _disc_kernel(s_ref, z_ref, w1_ref, b1_ref, w2_ref, b2_ref, w3_ref, o_ref):
    a1 = s_ref[0]          # PReLU alpha, layer 1 (SMEM scalar)
    a2 = s_ref[1]          # PReLU alpha, layer 2
    b3 = s_ref[2]          # bias of the final Linear(dim_h, 1)

    # Single f32 HBM stream for z; cast to bf16 in-register for the MXU.
    z = z_ref[...].astype(jnp.bfloat16)                               # (tm, Dz)

    h = jnp.dot(z, w1_ref[...],
                preferred_element_type=jnp.float32) + b1_ref[...]     # (tm, Dh) f32
    h = jnp.where(h >= 0.0, h, a1 * h)                                # PReLU

    h = jnp.dot(h.astype(jnp.bfloat16), w2_ref[...],
                preferred_element_type=jnp.float32) + b2_ref[...]     # (tm, Dh) f32
    h = jnp.where(h >= 0.0, h, a2 * h)                                # PReLU

    # Final Linear(dim_h -> 1) as a lane reduction (VPU/XLU), not an MXU matmul.
    logit = jnp.sum(h * w3_ref[...], axis=-1, keepdims=True) + b3     # (tm, 1)
    # Sigmoid with the divide on the EUP (approx reciprocal).
    sig = pl.reciprocal(1.0 + jnp.exp(-logit), approx=True)
    o_ref[...] = sig.astype(o_ref.dtype)


# -----------------------------------------------------------------------------
# One-time parameter preparation (hoisted out of the per-call forward)
# -----------------------------------------------------------------------------
def prepare_params(p):
    """Convert PyTorch-layout params into kernel-ready arrays, ONCE at load time.

    The (out,in)->(in,out) transposes and bf16 casts are an HBM relayout that
    must not be paid on every discriminator call.
    """
    dim_h = p["w1"].shape[0]
    scalars = jnp.stack([
        jnp.reshape(p["a1"], ()),
        jnp.reshape(p["a2"], ()),
        jnp.reshape(p["b3"], ()),
    ]).astype(jnp.float32)
    return {
        "w1t": jnp.asarray(p["w1"]).T.astype(jnp.bfloat16),           # (Dz, Dh)
        "b1": jnp.reshape(p["b1"], (1, dim_h)).astype(jnp.float32),
        "w2t": jnp.asarray(p["w2"]).T.astype(jnp.bfloat16),           # (Dh, Dh)
        "b2": jnp.reshape(p["b2"], (1, dim_h)).astype(jnp.float32),
        "w3": jnp.reshape(p["w3"], (1, dim_h)).astype(jnp.float32),   # tiny, keep f32
        "scalars": scalars,                                           # [a1, a2, b3]
    }


def discriminator_forward(z, kp):
    """z: (B, dim_z) f32, kp: prepare_params(...) output -> (B, 1) f32."""
    B, Dz = z.shape
    Dh = kp["w1t"].shape[1]

    tm = _pick_tile(B)
    Mp = _round_up(B, tm)
    if Mp != B:
        # Only ragged batches pay this copy; tail rows are garbage-safe
        # (rows are independent) and sliced off below.
        z = jnp.pad(z, ((0, Mp - B), (0, 0)))

    out = pl.pallas_call(
        _disc_kernel,
        out_shape=jax.ShapeDtypeStruct((Mp, 1), jnp.float32),
        grid_spec=pltpu.PrefetchScalarGridSpec(
            num_scalar_prefetch=0,
            grid=(Mp // tm,),
            in_specs=[
                pl.BlockSpec(memory_space=pltpu.MemorySpace.SMEM),    # [a1, a2, b3]
                pl.BlockSpec((tm, Dz), lambda i: (i, 0)),             # z tile (f32)
                pl.BlockSpec((Dz, Dh), lambda i: (0, 0)),             # W1^T (resident)
                pl.BlockSpec((1, Dh), lambda i: (0, 0)),              # b1
                pl.BlockSpec((Dh, Dh), lambda i: (0, 0)),             # W2^T (resident)
                pl.BlockSpec((1, Dh), lambda i: (0, 0)),              # b2
                pl.BlockSpec((1, Dh), lambda i: (0, 0)),              # w3
            ],
            out_specs=pl.BlockSpec((tm, 1), lambda i: (i, 0)),
        ),
        compiler_params=pltpu.CompilerParams(
            dimension_semantics=("parallel",),
            vmem_limit_bytes=40 * 1024 * 1024,   # covers tm=512 f32 z double-buffer
        ),
    )(kp["scalars"], z, kp["w1t"], kp["b1"], kp["w2t"], kp["b2"], kp["w3"])
    return out[:B]


# -----------------------------------------------------------------------------
# Pure-JAX reference (f32 everywhere) for correctness validation
# -----------------------------------------------------------------------------
def ref_forward(z, p):
    def prelu(x, a):
        return jnp.where(x >= 0, x, a * x)

    h = prelu(z @ p["w1"].T + p["b1"], p["a1"])
    h = prelu(h @ p["w2"].T + p["b2"], p["a2"])
    logit = h @ p["w3"].T + p["b3"]
    return jax.nn.sigmoid(logit)


# -----------------------------------------------------------------------------
# Deterministic parameter init (PyTorch nn.Linear / nn.PReLU defaults)
# -----------------------------------------------------------------------------
def init_params(key, dim_z=2048, dim_h=256):
    ks = jax.random.split(key, 6)

    def lin(kw, kb, fan_out, fan_in):
        bound = 1.0 / float(fan_in) ** 0.5
        w = jax.random.uniform(kw, (fan_out, fan_in), jnp.float32, -bound, bound)
        b = jax.random.uniform(kb, (fan_out,), jnp.float32, -bound, bound)
        return w, b

    p = {}
    p["w1"], p["b1"] = lin(ks[0], ks[1], dim_h, dim_z)
    p["a1"] = jnp.float32(0.25)   # nn.PReLU() default: single shared alpha
    p["w2"], p["b2"] = lin(ks[2], ks[3], dim_h, dim_h)
    p["a2"] = jnp.float32(0.25)
    p["w3"], p["b3"] = lin(ks[4], ks[5], 1, dim_h)
    return p


if __name__ == "__main__":
    key = jax.random.PRNGKey(0)
    kz1, kz2, kp = jax.random.split(key, 3)

    # Module defaults: dim_z=2048, dim_h=256.
    dim_z, dim_h = 2048, 256
    params = init_params(kp, dim_z=dim_z, dim_h=dim_h)
    kernel_params = prepare_params(params)       # one-time, outside the forward

    fwd = jax.jit(discriminator_forward)

    tests = [
        ("small", jax.random.normal(kz1, (4, dim_z), jnp.float32)),       # 1 tile
        ("multi", jax.random.normal(kz2, (300, dim_z), jnp.float32)),     # 2 tiles + pad
    ]
    for name, z in tests:
        y = jax.block_until_ready(fwd(z, kernel_params))
        assert y.shape == (z.shape[0], 1), (name, y.shape)
        assert bool(jnp.all((y >= 0.0) & (y <= 1.0))), name

        y_ref = jax.block_until_ready(ref_forward(z, params))
        err = jnp.max(jnp.abs(y - y_ref)) / (jnp.max(jnp.abs(y_ref)) + 1e-6)
        assert float(err) < 2e-2, f"{name}: mismatch vs reference, rel max err {float(err)}"

    print("KERNEL_OK")
</pallas_src>

<mosaic_0001>
module attributes {stable_mosaic.version = 11 : i64} {
  func.func @_disc_kernel(%arg0: i32, %arg1: memref<3xf32, #tpu.memory_space<smem>>, %arg2: memref<16x2048xf32, #tpu.memory_space<vmem>>, %arg3: memref<2048x256xbf16, #tpu.memory_space<vmem>>, %arg4: memref<1x256xf32, #tpu.memory_space<vmem>>, %arg5: memref<256x256xbf16, #tpu.memory_space<vmem>>, %arg6: memref<1x256xf32, #tpu.memory_space<vmem>>, %arg7: memref<1x256xf32, #tpu.memory_space<vmem>>, %arg8: memref<16x1xf32, #tpu.memory_space<vmem>>) attributes {dimension_semantics = [#tpu.dimension_semantics<parallel>], iteration_bounds = array<i64: 1>, scalar_prefetch = 0 : i64, scratch_operands = 0 : i64, tpu.core_type = #tpu.core_type<tc>, window_params = [{transform_indices = @transform_0, window_bounds = array<i64: 3>}, {transform_indices = @transform_1, window_bounds = array<i64: 16, 2048>}, {pipeline_mode = #tpu.pipeline_mode<synchronous>, transform_indices = @transform_2, window_bounds = array<i64: 2048, 256>}, {pipeline_mode = #tpu.pipeline_mode<synchronous>, transform_indices = @transform_3, window_bounds = array<i64: 1, 256>}, {pipeline_mode = #tpu.pipeline_mode<synchronous>, transform_indices = @transform_4, window_bounds = array<i64: 256, 256>}, {pipeline_mode = #tpu.pipeline_mode<synchronous>, transform_indices = @transform_5, window_bounds = array<i64: 1, 256>}, {pipeline_mode = #tpu.pipeline_mode<synchronous>, transform_indices = @transform_6, window_bounds = array<i64: 1, 256>}, {transform_indices = @transform_7, window_bounds = array<i64: 16, 1>}]} {
    %c0 = arith.constant 0 : index
    %0 = memref.load %arg1[%c0] : memref<3xf32, #tpu.memory_space<smem>>
    %c1 = arith.constant 1 : index
    %1 = memref.load %arg1[%c1] : memref<3xf32, #tpu.memory_space<smem>>
    %c2 = arith.constant 2 : index
    %2 = memref.load %arg1[%c2] : memref<3xf32, #tpu.memory_space<smem>>
    %c0_0 = arith.constant 0 : index
    %c0_1 = arith.constant 0 : index
    %3 = vector.load %arg2[%c0_0, %c0_1] : memref<16x2048xf32, #tpu.memory_space<vmem>>, vector<16x2048xf32>
    %4 = arith.truncf %3 : vector<16x2048xf32> to vector<16x2048xbf16>
    %c0_2 = arith.constant 0 : index
    %c0_3 = arith.constant 0 : index
    %5 = vector.load %arg3[%c0_2, %c0_3] : memref<2048x256xbf16, #tpu.memory_space<vmem>>, vector<2048x256xbf16>
    %cst = arith.constant dense<0.000000e+00> : vector<16x256xf32>
    %6 = tpu.matmul %4, %5, %cst {dimension_numbers = #tpu.dot_dimension_numbers<[1], [0], [0], [1], [0, 0, 1, 1], [], []>} : vector<16x2048xbf16>, vector<2048x256xbf16>, vector<16x256xf32> -> vector<16x256xf32>
    %c0_4 = arith.constant 0 : index
    %c0_5 = arith.constant 0 : index
    %7 = vector.load %arg4[%c0_4, %c0_5] : memref<1x256xf32, #tpu.memory_space<vmem>>, vector<1x256xf32>
    %8 = vector.broadcast %7 : vector<1x256xf32> to vector<16x256xf32>
    %9 = arith.addf %6, %8 : vector<16x256xf32>
    %cst_6 = arith.constant 0.000000e+00 : f32
    %10 = vector.broadcast %cst_6 : f32 to vector<16x256xf32>
    %11 = arith.cmpf oge, %9, %10 : vector<16x256xf32>
    %12 = vector.broadcast %0 : f32 to vector<16x256xf32>
    %13 = arith.mulf %12, %9 : vector<16x256xf32>
    %14 = arith.select %11, %9, %13 : vector<16x256xi1>, vector<16x256xf32>
    %15 = arith.truncf %14 : vector<16x256xf32> to vector<16x256xbf16>
    %c0_7 = arith.constant 0 : index
    %c0_8 = arith.constant 0 : index
    %16 = vector.load %arg5[%c0_7, %c0_8] : memref<256x256xbf16, #tpu.memory_space<vmem>>, vector<256x256xbf16>
    %cst_9 = arith.constant dense<0.000000e+00> : vector<16x256xf32>
    %17 = tpu.matmul %15, %16, %cst_9 {dimension_numbers = #tpu.dot_dimension_numbers<[1], [0], [0], [1], [0, 0, 1, 1], [], []>} : vector<16x256xbf16>, vector<256x256xbf16>, vector<16x256xf32> -> vector<16x256xf32>
    %c0_10 = arith.constant 0 : index
    %c0_11 = arith.constant 0 : index
    %18 = vector.load %arg6[%c0_10, %c0_11] : memref<1x256xf32, #tpu.memory_space<vmem>>, vector<1x256xf32>
    %19 = vector.broadcast %18 : vector<1x256xf32> to vector<16x256xf32>
    %20 = arith.addf %17, %19 : vector<16x256xf32>
    %cst_12 = arith.constant 0.000000e+00 : f32
    %21 = vector.broadcast %cst_12 : f32 to vector<16x256xf32>
    %22 = arith.cmpf oge, %20, %21 : vector<16x256xf32>
    %23 = vector.broadcast %1 : f32 to vector<16x256xf32>
    %24 = arith.mulf %23, %20 : vector<16x256xf32>
    %25 = arith.select %22, %20, %24 : vector<16x256xi1>, vector<16x256xf32>
    %c0_13 = arith.constant 0 : index
    %c0_14 = arith.constant 0 : index
    %26 = vector.load %arg7[%c0_13, %c0_14] : memref<1x256xf32, #tpu.memory_space<vmem>>, vector<1x256xf32>
    %27 = vector.broadcast %26 : vector<1x256xf32> to vector<16x256xf32>
    %28 = arith.mulf %25, %27 : vector<16x256xf32>
    %cst_15 = arith.constant dense<0.000000e+00> : vector<16xf32>
    %29 = vector.multi_reduction <add>, %28, %cst_15 [1] : vector<16x256xf32> to vector<16xf32>
    %30 = vector.shape_cast %29 : vector<16xf32> to vector<16x1xf32>
    %31 = vector.broadcast %2 : f32 to vector<16x1xf32>
    %32 = arith.addf %30, %31 : vector<16x1xf32>
    %cst_16 = arith.constant 0.000000e+00 : f32
    %33 = vector.broadcast %cst_16 : f32 to vector<16x1xf32>
    %34 = arith.subf %33, %32 : vector<16x1xf32>
    %35 = math.exp %34 : vector<16x1xf32>
    %cst_17 = arith.constant 1.000000e+00 : f32
    %36 = vector.broadcast %cst_17 : f32 to vector<16x1xf32>
    %37 = arith.addf %36, %35 : vector<16x1xf32>
    %38 = tpu.reciprocal %37 {approx = true} : vector<16x1xf32> -> vector<16x1xf32>
    %c0_18 = arith.constant 0 : index
    %c0_19 = arith.constant 0 : index
    %39 = vector.load %arg8[%c0_18, %c0_19] : memref<16x1xf32, #tpu.memory_space<vmem>>, vector<16x1xf32>
    tpu.vector_store %arg8[%c0_18, %c0_19], %38 {strides = array<i32>} : memref<16x1xf32, #tpu.memory_space<vmem>>, vector<16x1xf32>,
    return
  }
  func.func @transform_0(%arg0: i32) -> i32 {
    %c0_i32 = arith.constant 0 : i32
    %c0_i32_0 = arith.constant 0 : i32
    return %c0_i32 : i32
  }
  func.func @transform_1(%arg0: i32) -> (i32, i32) {
    %c0_i32 = arith.constant 0 : i32
    %c0_i32_0 = arith.constant 0 : i32
    return %arg0, %c0_i32 : i32, i32
  }
  func.func @transform_2(%arg0: i32) -> (i32, i32) {
    %c0_i32 = arith.constant 0 : i32
    %c0_i32_0 = arith.constant 0 : i32
    %c0_i32_1 = arith.constant 0 : i32
    return %c0_i32, %c0_i32_0 : i32, i32
  }
  func.func @transform_3(%arg0: i32) -> (i32, i32) {
    %c0_i32 = arith.constant 0 : i32
    %c0_i32_0 = arith.constant 0 : i32
    %c0_i32_1 = arith.constant 0 : i32
    return %c0_i32, %c0_i32_0 : i32, i32
  }
  func.func @transform_4(%arg0: i32) -> (i32, i32) {
    %c0_i32 = arith.constant 0 : i32
    %c0_i32_0 = arith.constant 0 : i32
    %c0_i32_1 = arith.constant 0 : i32
    return %c0_i32, %c0_i32_0 : i32, i32
  }
  func.func @transform_5(%arg0: i32) -> (i32, i32) {
    %c0_i32 = arith.constant 0 : i32
    %c0_i32_0 = arith.constant 0 : i32
    %c0_i32_1 = arith.constant 0 : i32
    return %c0_i32, %c0_i32_0 : i32, i32
  }
  func.func @transform_6(%arg0: i32) -> (i32, i32) {
    %c0_i32 = arith.constant 0 : i32
    %c0_i32_0 = arith.constant 0 : i32
    %c0_i32_1 = arith.constant 0 : i32
    return %c0_i32, %c0_i32_0 : i32, i32
  }
  func.func @transform_7(%arg0: i32) -> (i32, i32) {
    %c0_i32 = arith.constant 0 : i32
    %c0_i32_0 = arith.constant 0 : i32
    return %arg0, %c0_i32 : i32, i32
  }
}

</mosaic_0001>

<bundles_post_ra>
// kernel: discriminator_forward.1
= control target key start
LH: loop header
LB: loop body
LE: loop exit
PB: predicated region body
PF: predicated region fallthrough
CT: control target
= control target key end

     0   :  { %12 = vsyncpa [#allocation4], 0  ;;  %s3352_s0 = inlined_call_operand.vmem [shape: f32[3], index: 0, kind: input, shape index: {}]   ;;  %s3353_s1 = inlined_call_operand.vmem [shape: f32[16,2048], index: 1, kind: input, shape index: {}]   ;;  %s3354_s2 = inlined_call_operand.hbm [shape: bf16[2048,256], index: 2, kind: input, shape index: {}]   ;;  %s3355_s3 = inlined_call_operand.vmem [shape: f32[1,256], index: 3, kind: input, shape index: {}]   ;;  %s3356_s4 = inlined_call_operand.vmem [shape: bf16[256,256], index: 4, kind: input, shape index: {}]   ;;  %s3357_s5 = inlined_call_operand.vmem [shape: f32[1,256], index: 5, kind: input, shape index: {}]   ;;  %s3358_s6 = inlined_call_operand.vmem [shape: f32[1,256], index: 6, kind: input, shape index: {}]   ;;  %s3359_s7 = inlined_call_operand.vmem [shape: f32[16,1], index: 7, kind: output, shape index: {}]  }
   0x1   :  { %s20_s26 = sshll.u32 %s3352_s0, 4  ;;  %s21_s26 = int_to_ptr.vmem [resolvable:$true] %s20_s26 }
   0x2   :  { %13 = vsyncpa [#allocation3], 0  ;;  %s3049_s27 = scalar_lea.vmem %s21_s26, 16  ;;  %p3054_p1 = scmp.lt.s32.totalorder %s21_s26, %s21_s26 }
   0x3   :  { %p3050_p0 = scmp.ne.s32.totalorder %s21_s26, %s3049_s27  ;;  %p3055_p2 = scmp.lt.s32.totalorder %s3049_s27, %s3049_s27 }
   0x5   :  { %p3056_p3 = por %p3055_p2, %p3054_p1 }
   0x7   :  { %p3057_p4 = pnand %p3056_p3, %p3050_p0 }
   0x9   :  { %3060 = shalt.err (!%p3057_p4)
}
   0xa   :  { %s3085_s28 = smov [#allocation2]   ;;  %s3086_s29 = smov [#allocation5]  }
   0xb   :  { %23 = dma.vmem_to_smem %s21_s26, 16, %s3085_s28, [#allocation4]  }
   0xc   :  { %s31_s30 = sshll.u32 %s3086_s29, 4  ;;  %s32_s30 = int_to_ptr.vmem [resolvable:$true] %s31_s30 }
   0xd   :  { %s3069_s8 = scalar_lea.vmem %s32_s30, 32768  ;;  %p3074_p6 = scmp.lt.s32.totalorder %s32_s30, %s32_s30 }
   0xe   :  { %p3070_p5 = scmp.ne.s32.totalorder %s32_s30, %s3069_s8  ;;  %p3075_p7 = scmp.lt.s32.totalorder %s3069_s8, %s3069_s8 }
  0x10   :  { %p3076_p8 = por %p3075_p7, %p3074_p6 }
  0x12   :  { %p3077_p9 = pnand %p3076_p8, %p3070_p5 }
  0x14   :  { %3080 = shalt.err (!%p3077_p9)
}
  0x15   :  { %s3087_s0 = smov 128   ;;  %s3088_s9 = smov 8  }
  0x16   :  { %37 = dma.hbm_to_vmem [thread:$0]  %s3354_s2, 32768, %s32_s30, [#allocation3], %s3087_s0, %s3087_s0, %s3088_s9  }
  0x17   :  { %3081 = dma.done.wait [#allocation4], 16  }
  0x18   :  { %3082 = vsyncadd [#allocation4], 4294967280 }
  0x19   :  { %3083 = dma.done.wait [#allocation3], 32768  }
  0x1a   :  { %3084 = vsyncadd [#allocation3], 4294934528 }
  0x1b   :  { %52 = sfence }
  0x1c   :  { %v2609_v0 = vld [vmem:[#allocation5 + $0x74] ss:$8 sps:$4 sm:$0xff]   ;;  %v2613_v2 = vld [vmem:[#allocation5 + $0x70] ss:$8 sps:$4 sm:$0xff]   ;;  %v2615_v4 = vld [vmem:[#allocation5 + $0x64] ss:$8 sps:$4 sm:$0xff]  }
  0x1d   :  { %v2611_v1 = vld [vmem:[#allocation5 + $0x174] ss:$8 sps:$4 sm:$0xff]   ;;  %1652 = vmatprep.subr.bf16.mxu0 %v2609_v0  ;;  %v2614_v3 = vld [vmem:[#allocation5 + $0x170] ss:$8 sps:$4 sm:$0xff]   ;;  %v2617_v5 = vld [vmem:[#allocation5 + $0x164] ss:$8 sps:$4 sm:$0xff]  }
  0x1e   :  { %1695 = vmatprep.subr.bf16.mxu1 %v2611_v1  ;;  %1653 = vmatpush1.bf16.msra.mxu0 %v2613_v2  ;;  %v2619_v6 = vld [vmem:[#allocation5 + $0x60] ss:$8 sps:$4 sm:$0xff]   ;;  %v2621_v8 = vld [vmem:[#allocation5 + $0x54] ss:$8 sps:$4 sm:$0xff]   ;;  %v2625_v10 = vld [vmem:[#allocation5 + $0x50] ss:$8 sps:$4 sm:$0xff]  }
  0x1f   :  { %1696 = vmatpush1.bf16.msra.mxu1 %v2614_v3  ;;  %1654 = vmatprep.subr.bf16.mxu0 %v2615_v4  ;;  %v2620_v7 = vld [vmem:[#allocation5 + $0x160] ss:$8 sps:$4 sm:$0xff]   ;;  %v2623_v9 = vld [vmem:[#allocation5 + $0x154] ss:$8 sps:$4 sm:$0xff]   ;;  %v2626_v11 = vld [vmem:[#allocation5 + $0x150] ss:$8 sps:$4 sm:$0xff]  }
  0x20   :  { %1697 = vmatprep.subr.bf16.mxu1 %v2617_v5  ;;  %v2627_v12 = vld [vmem:[#allocation5 + $0x44] ss:$8 sps:$4 sm:$0xff]   ;;  %v2631_v14 = vld [vmem:[#allocation5 + $0x40] ss:$8 sps:$4 sm:$0xff]   ;;  %v2633_v16 = vld [vmem:[#allocation5 + $0x34] ss:$8 sps:$4 sm:$0xff]  }
  0x21   :  { %v2629_v13 = vld [vmem:[#allocation5 + $0x144] ss:$8 sps:$4 sm:$0xff]   ;;  %v2632_v15 = vld [vmem:[#allocation5 + $0x140] ss:$8 sps:$4 sm:$0xff]   ;;  %v2635_v17 = vld [vmem:[#allocation5 + $0x134] ss:$8 sps:$4 sm:$0xff]  }
  0x22   :  { %1655 = vmatpush1.bf16.msra.mxu0 %v2619_v6  ;;  %v2637_v18 = vld [vmem:[#allocation5 + $0x30] ss:$8 sps:$4 sm:$0xff]   ;;  %v2639_v20 = vld [vmem:[#allocation5 + $0x24] ss:$8 sps:$4 sm:$0xff]   ;;  %v2643_v22 = vld [vmem:[#allocation5 + $0x20] ss:$8 sps:$4 sm:$0xff]  }
  0x23   :  { %1698 = vmatpush1.bf16.msra.mxu1 %v2620_v7  ;;  %1656 = vmatprep.subr.bf16.mxu0 %v2621_v8  ;;  %v2638_v19 = vld [vmem:[#allocation5 + $0x130] ss:$8 sps:$4 sm:$0xff]   ;;  %v2641_v21 = vld [vmem:[#allocation5 + $0x124] ss:$8 sps:$4 sm:$0xff]   ;;  %v2644_v23 = vld [vmem:[#allocation5 + $0x120] ss:$8 sps:$4 sm:$0xff]  }
  0x24   :  { %1699 = vmatprep.subr.bf16.mxu1 %v2623_v9  ;;  %v2645_v24 = vld [vmem:[#allocation5 + $0x14] ss:$8 sps:$4 sm:$0xff]   ;;  %v2649_v26 = vld [vmem:[#allocation5 + $0x10] ss:$8 sps:$4 sm:$0xff]   ;;  %v2651_v28 = vld [vmem:[#allocation5 + $0x4] ss:$8 sps:$4 sm:$0xff]  }
  0x25   :  { %v2647_v25 = vld [vmem:[#allocation5 + $0x114] ss:$8 sps:$4 sm:$0xff]   ;;  %v2650_v27 = vld [vmem:[#allocation5 + $0x110] ss:$8 sps:$4 sm:$0xff]   ;;  %v2653_v29 = vld [vmem:[#allocation5 + $0x104] ss:$8 sps:$4 sm:$0xff]  }
  0x26   :  { %1657 = vmatpush1.bf16.msra.mxu0 %v2625_v10  ;;  %v2655_v30 = vld [vmem:[#allocation5] ss:$8 sps:$4 sm:$0xff]   ;;  %v2657_v32 = vld [vmem:[#allocation5 + $0xf4] ss:$8 sps:$4 sm:$0xff]   ;;  %v2661_v34 = vld [vmem:[#allocation5 + $0xf0] ss:$8 sps:$4 sm:$0xff]  }
  0x27   :  { %1700 = vmatpush1.bf16.msra.mxu1 %v2626_v11  ;;  %1658 = vmatprep.subr.bf16.mxu0 %v2627_v12  ;;  %v2656_v31 = vld [vmem:[#allocation5 + $0x100] ss:$8 sps:$4 sm:$0xff]   ;;  %v2659_v33 = vld [vmem:[#allocation5 + $0x1f4] ss:$8 sps:$4 sm:$0xff]   ;;  %v2662_v35 = vld [vmem:[#allocation5 + $0x1f0] ss:$8 sps:$4 sm:$0xff]  }
  0x28   :  { %1701 = vmatprep.subr.bf16.mxu1 %v2629_v13  ;;  %v2663_v36 = vld [vmem:[#allocation5 + $0xe4] ss:$8 sps:$4 sm:$0xff]   ;;  %v2667_v38 = vld [vmem:[#allocation5 + $0xe0] ss:$8 sps:$4 sm:$0xff]   ;;  %v2669_v40 = vld [vmem:[#allocation5 + $0xd4] ss:$8 sps:$4 sm:$0xff]  }
  0x29   :  { %v2665_v37 = vld [vmem:[#allocation5 + $0x1e4] ss:$8 sps:$4 sm:$0xff]   ;;  %v2668_v39 = vld [vmem:[#allocation5 + $0x1e0] ss:$8 sps:$4 sm:$0xff]   ;;  %v2671_v41 = vld [vmem:[#allocation5 + $0x1d4] ss:$8 sps:$4 sm:$0xff]  }
  0x2a   :  { %1659 = vmatpush1.bf16.msra.mxu0 %v2631_v14  ;;  %v2673_v42 = vld [vmem:[#allocation5 + $0xd0] ss:$8 sps:$4 sm:$0xff]   ;;  %v2675_v44 = vld [vmem:[#allocation5 + $0xc4] ss:$8 sps:$4 sm:$0xff]   ;;  %v2679_v50 = vld [vmem:[#allocation5 + $0xc0] ss:$8 sps:$4 sm:$0xff]  }
  0x2b   :  { %1702 = vmatpush1.bf16.msra.mxu1 %v2632_v15  ;;  %1660 = vmatprep.subr.bf16.mxu0 %v2633_v16  ;;  %v2674_v43 = vld [vmem:[#allocation5 + $0x1d0] ss:$8 sps:$4 sm:$0xff]   ;;  %v2677_v45 = vld [vmem:[#allocation5 + $0x1c4] ss:$8 sps:$4 sm:$0xff]   ;;  %v2680_v51 = vld [vmem:[#allocation5 + $0x1c0] ss:$8 sps:$4 sm:$0xff]  }
  0x2c   :  { %1703 = vmatprep.subr.bf16.mxu1 %v2635_v17  ;;  %v57_v46 = vld [vmem:[%s3353_s1 + $0x8] sm:$0xff]  ;;  %v59_v48 = vld [vmem:[%s3353_s1 + $0x18] sm:$0xff]  ;;  %v56_v6 = vld [vmem:[%s3353_s1] sm:$0xff]  ;;  %s2315_s12 = sld [smem:[#allocation2 + $0x1]]  ;;  %vm2306_vm8 = vcmask 7168  }
  0x2d   :  { %v73_v47 = vld [vmem:[%s3353_s1 + $0x88] sm:$0xff]  ;;  %v75_v49 = vld [vmem:[%s3353_s1 + $0x98] sm:$0xff]  ;;  %v72_v7 = vld [vmem:[%s3353_s1 + $0x80] sm:$0xff] }
  0x2e   :  { %1661 = vmatpush1.bf16.msra.mxu0 %v2637_v18  ;;  %v2681_v52 = vld [vmem:[#allocation5 + $0xb4] ss:$8 sps:$4 sm:$0xff]   ;;  %v89_v53 = vpack.c.bf16 %v73_v47, %v57_v46  ;;  %v91_v54 = vpack.c.bf16 %v75_v49, %v59_v48  ;;  %v2685_v56 = vld [vmem:[#allocation5 + $0xb0] ss:$8 sps:$4 sm:$0xff]   ;;  %v2687_v58 = vld [vmem:[#allocation5 + $0xa4] ss:$8 sps:$4 sm:$0xff]   ;;  %v88_v12 = vpack.c.bf16 %v72_v7, %v56_v6 }
  0x2f   :  { %1704 = vmatpush1.bf16.msra.mxu1 %v2638_v19  ;;  %1662 = vmatprep.subr.bf16.mxu0 %v2639_v20  ;;  %v2683_v55 = vld [vmem:[#allocation5 + $0x1b4] ss:$8 sps:$4 sm:$0xff]   ;;  %v2686_v57 = vld [vmem:[#allocation5 + $0x1b0] ss:$8 sps:$4 sm:$0xff]   ;;  %v2689_v59 = vld [vmem:[#allocation5 + $0x1a4] ss:$8 sps:$4 sm:$0xff]  }
  0x30   :  { %1705 = vmatprep.subr.bf16.mxu1 %v2641_v21  ;;  %1684 = vmatprep.mubr.bf16.mxu0 %v89_v53  ;;  %v2691_v60 = vld [vmem:[#allocation5 + $0xa0] ss:$8 sps:$4 sm:$0xff]   ;;  %v2693_v62 = vld [vmem:[#allocation5 + $0x94] ss:$8 sps:$4 sm:$0xff]   ;;  %v2697_v0 = vld [vmem:[#allocation5 + $0x90] ss:$8 sps:$4 sm:$0xff]  }
  0x31   :  { %1727 = vmatprep.mubr.bf16.mxu1 %v91_v54  ;;  %v2692_v61 = vld [vmem:[#allocation5 + $0x1a0] ss:$8 sps:$4 sm:$0xff]   ;;  %v2695_v63 = vld [vmem:[#allocation5 + $0x194] ss:$8 sps:$4 sm:$0xff]   ;;  %v2698_v1 = vld [vmem:[#allocation5 + $0x190] ss:$8 sps:$4 sm:$0xff]  }
  0x32   :  { %1663 = vmatpush1.bf16.msra.mxu0 %v2643_v22  ;;  %v2699_v2 = vld [vmem:[#allocation5 + $0x84] ss:$8 sps:$4 sm:$0xff]   ;;  %v2703_v4 = vld [vmem:[#allocation5 + $0x80] ss:$8 sps:$4 sm:$0xff]   ;;  %v58_v8 = vld [vmem:[%s3353_s1 + $0x10] sm:$0xff] }
  0x33   :  { %1706 = vmatpush1.bf16.msra.mxu1 %v2644_v23  ;;  %1664 = vmatprep.subr.bf16.mxu0 %v2645_v24  ;;  %v2701_v3 = vld [vmem:[#allocation5 + $0x184] ss:$8 sps:$4 sm:$0xff]   ;;  %v2704_v5 = vld [vmem:[#allocation5 + $0x180] ss:$8 sps:$4 sm:$0xff]   ;;  %v74_v9 = vld [vmem:[%s3353_s1 + $0x90] sm:$0xff] }
  0x34   :  { %1707 = vmatprep.subr.bf16.mxu1 %v2647_v25  ;;  %v2707_v10 = vld [vmem:[#allocation5 + $0x274] ss:$8 sps:$4 sm:$0xff]   ;;  %v90_v13 = vpack.c.bf16 %v74_v9, %v58_v8  ;;  %v2705_v14 = vld [vmem:[#allocation5 + $0x270] ss:$8 sps:$4 sm:$0xff]   ;;  %v2713_v16 = vld [vmem:[#allocation5 + $0x264] ss:$8 sps:$4 sm:$0xff]  }
  0x35   :  { %v2710_v11 = vld [vmem:[#allocation5 + $0x374] ss:$8 sps:$4 sm:$0xff]   ;;  %v2708_v15 = vld [vmem:[#allocation5 + $0x370] ss:$8 sps:$4 sm:$0xff]   ;;  %v2716_v17 = vld [vmem:[#allocation5 + $0x364] ss:$8 sps:$4 sm:$0xff]  }
  0x36   :  { %1665 = vmatpush1.bf16.msra.mxu0 %v2649_v26  ;;  %v2711_v18 = vld [vmem:[#allocation5 + $0x260] ss:$8 sps:$4 sm:$0xff]   ;;  %v2719_v20 = vld [vmem:[#allocation5 + $0x254] ss:$8 sps:$4 sm:$0xff]   ;;  %v2717_v22 = vld [vmem:[#allocation5 + $0x250] ss:$8 sps:$4 sm:$0xff]  }
  0x37   :  { %1708 = vmatpush1.bf16.msra.mxu1 %v2650_v27  ;;  %1666 = vmatprep.subr.bf16.mxu0 %v2651_v28  ;;  %v2714_v19 = vld [vmem:[#allocation5 + $0x360] ss:$8 sps:$4 sm:$0xff]   ;;  %v2722_v21 = vld [vmem:[#allocation5 + $0x354] ss:$8 sps:$4 sm:$0xff]   ;;  %v2720_v23 = vld [vmem:[#allocation5 + $0x350] ss:$8 sps:$4 sm:$0xff]  }
  0x38   :  { %1709 = vmatprep.subr.bf16.mxu1 %v2653_v29  ;;  %v2725_v24 = vld [vmem:[#allocation5 + $0x244] ss:$8 sps:$4 sm:$0xff]   ;;  %v2723_v26 = vld [vmem:[#allocation5 + $0x240] ss:$8 sps:$4 sm:$0xff]   ;;  %v2731_v28 = vld [vmem:[#allocation5 + $0x234] ss:$8 sps:$4 sm:$0xff]  }
  0x39   :  { %v2728_v25 = vld [vmem:[#allocation5 + $0x344] ss:$8 sps:$4 sm:$0xff]   ;;  %v2726_v27 = vld [vmem:[#allocation5 + $0x340] ss:$8 sps:$4 sm:$0xff]   ;;  %v2734_v29 = vld [vmem:[#allocation5 + $0x334] ss:$8 sps:$4 sm:$0xff]  }
  0x3a   :  { %1667 = vmatpush1.bf16.msra.mxu0 %v2655_v30  ;;  %v2729_v30 = vld [vmem:[#allocation5 + $0x230] ss:$8 sps:$4 sm:$0xff]   ;;  %v2747_v48 = vld [vmem:[#allocation5 + $0x200] ss:$8 sps:$4 sm:$0xff]   ;;  %v2761_v54 = vld [vmem:[#allocation5 + $0x2e4] ss:$8 sps:$4 sm:$0xff]  }
  0x3b   :  { %1710 = vmatpush1.bf16.msra.mxu1 %v2656_v31  ;;  %1668 = vmatprep.subr.bf16.mxu0 %v2657_v32  ;;  %v2732_v31 = vld [vmem:[#allocation5 + $0x330] ss:$8 sps:$4 sm:$0xff]   ;;  %v2737_v32 = vld [vmem:[#allocation5 + $0x224] ss:$8 sps:$4 sm:$0xff]   ;;  %v2750_v49 = vld [vmem:[#allocation5 + $0x300] ss:$8 sps:$4 sm:$0xff]  }
  0x3c   :  { %1711 = vmatprep.subr.bf16.mxu1 %v2659_v33  ;;  %v2740_v33 = vld [vmem:[#allocation5 + $0x324] ss:$8 sps:$4 sm:$0xff]   ;;  %v79_v46 = vld [vmem:[%s3353_s1 + $0xb8] sm:$0xff]  ;;  %v2783_v8 = vld [vmem:[#allocation5 + $0x2a0] ss:$8 sps:$4 sm:$0xff]  }
  0x3d   :  { %v2756_v53 = vld [vmem:[#allocation5 + $0x3f0] ss:$8 sps:$4 sm:$0xff]   ;;  %v2785_v6 = vld [vmem:[#allocation5 + $0x2a4] ss:$8 sps:$4 sm:$0xff]   ;;  %v2786_v9 = vld [vmem:[#allocation5 + $0x3a0] ss:$8 sps:$4 sm:$0xff]  }
  0x3e   :  { %1669 = vmatpush2.bf16.msra.mxu0 %v2661_v34  ;;  %v2735_v34 = vld [vmem:[#allocation5 + $0x220] ss:$8 sps:$4 sm:$0xff]   ;;  %v2788_v7 = vld [vmem:[#allocation5 + $0x3a4] ss:$8 sps:$4 sm:$0xff]  }
  0x3f   :  { %1712 = vmatpush2.bf16.msra.mxu1 %v2662_v35  ;;  %1670 = vmatprep.subr.bf16.mxu0 %v2663_v36  ;;  %v2738_v35 = vld [vmem:[#allocation5 + $0x320] ss:$8 sps:$4 sm:$0xff]   ;;  %v2743_v36 = vld [vmem:[#allocation5 + $0x214] ss:$8 sps:$4 sm:$0xff]  }
  0x40   :  { %1713 = vmatprep.subr.bf16.mxu1 %v2665_v37  ;;  %v2746_v37 = vld [vmem:[#allocation5 + $0x314] ss:$8 sps:$4 sm:$0xff]  }
  0x42   :  { %1671 = vmatpush2.bf16.msra.mxu0 %v2667_v38  ;;  %v2741_v38 = vld [vmem:[#allocation5 + $0x210] ss:$8 sps:$4 sm:$0xff]  }
  0x43   :  { %1714 = vmatpush2.bf16.msra.mxu1 %v2668_v39  ;;  %1672 = vmatprep.subr.bf16.mxu0 %v2669_v40  ;;  %v2744_v39 = vld [vmem:[#allocation5 + $0x310] ss:$8 sps:$4 sm:$0xff]   ;;  %v61_v40 = vld [vmem:[%s3353_s1 + $0x28] sm:$0xff] }
  0x44   :  { %1715 = vmatprep.subr.bf16.mxu1 %v2671_v41  ;;  %v77_v41 = vld [vmem:[%s3353_s1 + $0xa8] sm:$0xff] }
  0x46   :  { %1673 = vmatpush2.bf16.msra.mxu0 %v2673_v42  ;;  %v63_v42 = vld [vmem:[%s3353_s1 + $0x38] sm:$0xff] }
  0x47   :  { %1716 = vmatpush2.bf16.msra.mxu1 %v2674_v43  ;;  %1674 = vmatprep.subr.bf16.mxu0 %v2675_v44  ;;  %v2749_v43 = vld [vmem:[#allocation5 + $0x204] ss:$8 sps:$4 sm:$0xff]   ;;  %v95_v47 = vpack.c.bf16 %v79_v46, %v63_v42  ;;  %v2827_v46 = vld [vmem:[#allocation5 + $0x434] ss:$8 sps:$4 sm:$0xff]  }
  0x48   :  { %1717 = vmatprep.subr.bf16.mxu1 %v2677_v45  ;;  %v2752_v44 = vld [vmem:[#allocation5 + $0x304] ss:$8 sps:$4 sm:$0xff]   ;;  %v93_v45 = vpack.c.bf16 %v77_v41, %v61_v40  ;;  %v2816_v40 = vld [vmem:[#allocation5 + $0x550] ss:$8 sps:$4 sm:$0xff]  }
  0x49   :  { %v2821_v42 = vld [vmem:[#allocation5 + $0x444] ss:$8 sps:$4 sm:$0xff]  }
  0x4a   :  { %1675 = vmatpush2.bf16.msra.mxu0 %v2679_v50  ;;  %v2755_v50 = vld [vmem:[#allocation5 + $0x2f4] ss:$8 sps:$4 sm:$0xff]  }
  0x4b   :  { %1718 = vmatpush2.bf16.msra.mxu1 %v2680_v51  ;;  %1676 = vmatprep.subr.bf16.mxu0 %v2681_v52  ;;  %v2758_v51 = vld [vmem:[#allocation5 + $0x3f4] ss:$8 sps:$4 sm:$0xff]   ;;  %v2753_v52 = vld [vmem:[#allocation5 + $0x2f0] ss:$8 sps:$4 sm:$0xff]  }
  0x4c   :  { %1719 = vmatprep.subr.bf16.mxu1 %v2683_v55  ;;  %v2764_v55 = vld [vmem:[#allocation5 + $0x3e4] ss:$8 sps:$4 sm:$0xff]  }
  0x4e   :  { %1677 = vmatpush2.bf16.msra.mxu0 %v2685_v56  ;;  %v2759_v56 = vld [vmem:[#allocation5 + $0x2e0] ss:$8 sps:$4 sm:$0xff]  }
  0x4f   :  { %1720 = vmatpush2.bf16.msra.mxu1 %v2686_v57  ;;  %1678 = vmatprep.subr.bf16.mxu0 %v2687_v58  ;;  %v2762_v57 = vld [vmem:[#allocation5 + $0x3e0] ss:$8 sps:$4 sm:$0xff]   ;;  %v2767_v58 = vld [vmem:[#allocation5 + $0x2d4] ss:$8 sps:$4 sm:$0xff]  }
  0x50   :  { %1721 = vmatprep.subr.bf16.mxu1 %v2689_v59  ;;  %v2770_v59 = vld [vmem:[#allocation5 + $0x3d4] ss:$8 sps:$4 sm:$0xff]  }
  0x52   :  { %1679 = vmatpush2.bf16.msra.mxu0 %v2691_v60  ;;  %v2765_v60 = vld [vmem:[#allocation5 + $0x2d0] ss:$8 sps:$4 sm:$0xff]  }
  0x53   :  { %1722 = vmatpush2.bf16.msra.mxu1 %v2692_v61  ;;  %1680 = vmatprep.subr.bf16.mxu0 %v2693_v62  ;;  %v2768_v61 = vld [vmem:[#allocation5 + $0x3d0] ss:$8 sps:$4 sm:$0xff]   ;;  %v2773_v62 = vld [vmem:[#allocation5 + $0x2c4] ss:$8 sps:$4 sm:$0xff]  }
  0x54   :  { %1723 = vmatprep.subr.bf16.mxu1 %v2695_v63  ;;  %v2776_v63 = vld [vmem:[#allocation5 + $0x3c4] ss:$8 sps:$4 sm:$0xff]  }
  0x56   :  { %1681 = vmatpush2.bf16.msra.mxu0 %v2697_v0  ;;  %v2771_v0 = vld [vmem:[#allocation5 + $0x2c0] ss:$8 sps:$4 sm:$0xff]  }
  0x57   :  { %1724 = vmatpush2.bf16.msra.mxu1 %v2698_v1  ;;  %1682 = vmatprep.subr.bf16.mxu0 %v2699_v2  ;;  %v2774_v1 = vld [vmem:[#allocation5 + $0x3c0] ss:$8 sps:$4 sm:$0xff]   ;;  %v2779_v2 = vld [vmem:[#allocation5 + $0x2b4] ss:$8 sps:$4 sm:$0xff]  }
  0x58   :  { %1725 = vmatprep.subr.bf16.mxu1 %v2701_v3  ;;  %v2782_v3 = vld [vmem:[#allocation5 + $0x3b4] ss:$8 sps:$4 sm:$0xff]  }
  0x5a   :  { %1683 = vmatpush2.bf16.msra.mxu0 %v2703_v4  ;;  %v2777_v4 = vld [vmem:[#allocation5 + $0x2b0] ss:$8 sps:$4 sm:$0xff]  }
  0x5b   :  { %1726 = vmatpush2.bf16.msra.mxu1 %v2704_v5  ;;  %1738 = vmatprep.subr.bf16.mxu0 %v2707_v10  ;;  %v2780_v5 = vld [vmem:[#allocation5 + $0x3b0] ss:$8 sps:$4 sm:$0xff]   ;;  %v2791_v10 = vld [vmem:[#allocation5 + $0x294] ss:$8 sps:$4 sm:$0xff]  }
  0x5c   :  { %1781 = vmatprep.subr.bf16.mxu1 %v2710_v11  ;;  %v2794_v11 = vld [vmem:[#allocation5 + $0x394] ss:$8 sps:$4 sm:$0xff]  }
  0x5d   :  { %1685 = vmatmul.mubr.bf16.vlgmr.msra.gmra.mxu0 %v88_v12  ;;  %v2789_v12 = vld [vmem:[#allocation5 + $0x290] ss:$8 sps:$4 sm:$0xff]  }
  0x5e   :  { %1728 = vmatmul.mubr.bf16.vlgmr.msra.gmra.mxu1 %v90_v13  ;;  %1739 = vmatpush1.bf16.msra.mxu0 %v2705_v14  ;;  %v2792_v13 = vld [vmem:[#allocation5 + $0x390] ss:$8 sps:$4 sm:$0xff]   ;;  %v2797_v14 = vld [vmem:[#allocation5 + $0x284] ss:$8 sps:$4 sm:$0xff]  }
  0x5f   :  { %1782 = vmatpush1.bf16.msra.mxu1 %v2708_v15  ;;  %1740 = vmatprep.subr.bf16.mxu0 %v2713_v16  ;;  %v2800_v15 = vld [vmem:[#allocation5 + $0x384] ss:$8 sps:$4 sm:$0xff]   ;;  %v2795_v16 = vld [vmem:[#allocation5 + $0x280] ss:$8 sps:$4 sm:$0xff]  }
  0x60   :  { %1783 = vmatprep.subr.bf16.mxu1 %v2716_v17  ;;  %1770 = vmatprep.mubr.bf16.mxu0 %v93_v45  ;;  %v2798_v17 = vld [vmem:[#allocation5 + $0x380] ss:$8 sps:$4 sm:$0xff]  }
  0x61   :  { %1813 = vmatprep.mubr.bf16.mxu1 %v95_v47  ;;  %v2822_v45 = vld [vmem:[#allocation5 + $0x540] ss:$8 sps:$4 sm:$0xff]   ;;  %v2830_v47 = vld [vmem:[#allocation5 + $0x534] ss:$8 sps:$4 sm:$0xff]  }
  0x62   :  { %1741 = vmatpush1.bf16.msra.mxu0 %v2711_v18  ;;  %v60_v18 = vld [vmem:[%s3353_s1 + $0x20] sm:$0xff] }
  0x63   :  { %1784 = vmatpush1.bf16.msra.mxu1 %v2714_v19  ;;  %1742 = vmatprep.subr.bf16.mxu0 %v2719_v20  ;;  %v76_v19 = vld [vmem:[%s3353_s1 + $0xa0] sm:$0xff]  ;;  %v62_v20 = vld [vmem:[%s3353_s1 + $0x30] sm:$0xff] }
  0x64   :  { %1785 = vmatprep.subr.bf16.mxu1 %v2722_v21  ;;  %v78_v21 = vld [vmem:[%s3353_s1 + $0xb0] sm:$0xff] }
  0x66   :  { %1743 = vmatpush1.bf16.msra.mxu0 %v2717_v22  ;;  %v2803_v22 = vld [vmem:[#allocation5 + $0x474] ss:$8 sps:$4 sm:$0xff]  }
  0x67   :  { %1786 = vmatpush1.bf16.msra.mxu1 %v2720_v23  ;;  %1744 = vmatprep.subr.bf16.mxu0 %v2725_v24  ;;  %v2806_v23 = vld [vmem:[#allocation5 + $0x574] ss:$8 sps:$4 sm:$0xff]   ;;  %v92_v24 = vpack.c.bf16 %v76_v19, %v60_v18  ;;  %v2881_v18 = vld [vmem:[#allocation5 + $0x4a4] ss:$8 sps:$4 sm:$0xff]  }
  0x68   :  { %1787 = vmatprep.subr.bf16.mxu1 %v2728_v25  ;;  %v94_v25 = vpack.c.bf16 %v78_v21, %v62_v20  ;;  %v2884_v19 = vld [vmem:[#allocation5 + $0x5a4] ss:$8 sps:$4 sm:$0xff]   ;;  %v2879_v20 = vld [vmem:[#allocation5 + $0x4a0] ss:$8 sps:$4 sm:$0xff]  }
  0x69   :  { %v2882_v21 = vld [vmem:[#allocation5 + $0x5a0] ss:$8 sps:$4 sm:$0xff]  }
  0x6a   :  { %1745 = vmatpush1.bf16.msra.mxu0 %v2723_v26  ;;  %v2801_v26 = vld [vmem:[#allocation5 + $0x470] ss:$8 sps:$4 sm:$0xff]  }
  0x6b   :  { %1788 = vmatpush1.bf16.msra.mxu1 %v2726_v27  ;;  %1746 = vmatprep.subr.bf16.mxu0 %v2731_v28  ;;  %v2804_v27 = vld [vmem:[#allocation5 + $0x570] ss:$8 sps:$4 sm:$0xff]   ;;  %v2809_v28 = vld [vmem:[#allocation5 + $0x464] ss:$8 sps:$4 sm:$0xff]  }
  0x6c   :  { %1789 = vmatprep.subr.bf16.mxu1 %v2734_v29  ;;  %v2812_v29 = vld [vmem:[#allocation5 + $0x564] ss:$8 sps:$4 sm:$0xff]  }
  0x6e   :  { %1747 = vmatpush1.bf16.msra.mxu0 %v2729_v30  ;;  %v2807_v30 = vld [vmem:[#allocation5 + $0x460] ss:$8 sps:$4 sm:$0xff]  }
  0x6f   :  { %1790 = vmatpush1.bf16.msra.mxu1 %v2732_v31  ;;  %1748 = vmatprep.subr.bf16.mxu0 %v2737_v32  ;;  %v2810_v31 = vld [vmem:[#allocation5 + $0x560] ss:$8 sps:$4 sm:$0xff]   ;;  %v2815_v32 = vld [vmem:[#allocation5 + $0x454] ss:$8 sps:$4 sm:$0xff]  }
  0x70   :  { %1791 = vmatprep.subr.bf16.mxu1 %v2740_v33  ;;  %v2818_v33 = vld [vmem:[#allocation5 + $0x554] ss:$8 sps:$4 sm:$0xff]  }
  0x72   :  { %1749 = vmatpush1.bf16.msra.mxu0 %v2735_v34  ;;  %v65_v34 = vld [vmem:[%s3353_s1 + $0x48] sm:$0xff] }
  0x73   :  { %1792 = vmatpush1.bf16.msra.mxu1 %v2738_v35  ;;  %1750 = vmatprep.subr.bf16.mxu0 %v2743_v36  ;;  %v81_v35 = vld [vmem:[%s3353_s1 + $0xc8] sm:$0xff] }
  0x74   :  { %1793 = vmatprep.subr.bf16.mxu1 %v2746_v37  ;;  %v97_v36 = vpack.c.bf16 %v81_v35, %v65_v34  ;;  %v67_v37 = vld [vmem:[%s3353_s1 + $0x58] sm:$0xff] }
  0x75   :  { %v2899_v34 = vld [vmem:[#allocation5 + $0x674] ss:$8 sps:$4 sm:$0xff]  }
  0x76   :  { %1751 = vmatpush1.bf16.msra.mxu0 %v2741_v38  ;;  %v83_v38 = vld [vmem:[%s3353_s1 + $0xd8] sm:$0xff] }
  0x77   :  { %1794 = vmatpush1.bf16.msra.mxu1 %v2744_v39  ;;  %1752 = vmatprep.subr.bf16.mxu0 %v2749_v43  ;;  %v2813_v39 = vld [vmem:[#allocation5 + $0x450] ss:$8 sps:$4 sm:$0xff]   ;;  %v99_v41 = vpack.c.bf16 %v83_v38, %v67_v37  ;;  %v2824_v43 = vld [vmem:[#allocation5 + $0x544] ss:$8 sps:$4 sm:$0xff]   ;;  %v2902_v35 = vld [vmem:[#allocation5 + $0x774] ss:$8 sps:$4 sm:$0xff]  }
  0x78   :  { %1795 = vmatprep.subr.bf16.mxu1 %v2752_v44  ;;  %v2819_v44 = vld [vmem:[#allocation5 + $0x440] ss:$8 sps:$4 sm:$0xff]   ;;  %v71_v38 = vld [vmem:[%s3353_s1 + $0x78] sm:$0xff] }
  0x79   :  { %v85_v37 = vld [vmem:[%s3353_s1 + $0xe8] sm:$0xff] }
  0x7a   :  { %1753 = vmatpush1.bf16.msra.mxu0 %v2747_v48  ;;  %v2825_v48 = vld [vmem:[#allocation5 + $0x430] ss:$8 sps:$4 sm:$0xff]  }
  0x7b   :  { %1796 = vmatpush1.bf16.msra.mxu1 %v2750_v49  ;;  %1754 = vmatprep.subr.bf16.mxu0 %v2755_v50  ;;  %v2828_v49 = vld [vmem:[#allocation5 + $0x530] ss:$8 sps:$4 sm:$0xff]   ;;  %v2833_v50 = vld [vmem:[#allocation5 + $0x424] ss:$8 sps:$4 sm:$0xff]  }
  0x7c   :  { %1797 = vmatprep.subr.bf16.mxu1 %v2758_v51  ;;  %v2836_v51 = vld [vmem:[#allocation5 + $0x524] ss:$8 sps:$4 sm:$0xff]  }
  0x7e   :  { %1755 = vmatpush2.bf16.msra.mxu0 %v2753_v52  ;;  %v2831_v52 = vld [vmem:[#allocation5 + $0x420] ss:$8 sps:$4 sm:$0xff]  }
  0x7f   :  { %1798 = vmatpush2.bf16.msra.mxu1 %v2756_v53  ;;  %1756 = vmatprep.subr.bf16.mxu0 %v2761_v54  ;;  %v2834_v53 = vld [vmem:[#allocation5 + $0x520] ss:$8 sps:$4 sm:$0xff]   ;;  %v2839_v54 = vld [vmem:[#allocation5 + $0x414] ss:$8 sps:$4 sm:$0xff]  }
  0x80   :  { %1799 = vmatprep.subr.bf16.mxu1 %v2764_v55  ;;  %v2842_v55 = vld [vmem:[#allocation5 + $0x514] ss:$8 sps:$4 sm:$0xff]  }
  0x82   :  { %1757 = vmatpush2.bf16.msra.mxu0 %v2759_v56  ;;  %v2837_v56 = vld [vmem:[#allocation5 + $0x410] ss:$8 sps:$4 sm:$0xff]  }
  0x83   :  { %1800 = vmatpush2.bf16.msra.mxu1 %v2762_v57  ;;  %1758 = vmatprep.subr.bf16.mxu0 %v2767_v58  ;;  %v2840_v57 = vld [vmem:[#allocation5 + $0x510] ss:$8 sps:$4 sm:$0xff]   ;;  %v2845_v58 = vld [vmem:[#allocation5 + $0x404] ss:$8 sps:$4 sm:$0xff]  }
  0x84   :  { %1801 = vmatprep.subr.bf16.mxu1 %v2770_v59  ;;  %v2848_v59 = vld [vmem:[#allocation5 + $0x504] ss:$8 sps:$4 sm:$0xff]  }
  0x86   :  { %1759 = vmatpush2.bf16.msra.mxu0 %v2765_v60  ;;  %v2843_v60 = vld [vmem:[#allocation5 + $0x400] ss:$8 sps:$4 sm:$0xff]  }
  0x87   :  { %1802 = vmatpush2.bf16.msra.mxu1 %v2768_v61  ;;  %1760 = vmatprep.subr.bf16.mxu0 %v2773_v62  ;;  %v2846_v61 = vld [vmem:[#allocation5 + $0x500] ss:$8 sps:$4 sm:$0xff]   ;;  %v2851_v62 = vld [vmem:[#allocation5 + $0x4f4] ss:$8 sps:$4 sm:$0xff]  }
  0x88   :  { %1803 = vmatprep.subr.bf16.mxu1 %v2776_v63  ;;  %v2854_v63 = vld [vmem:[#allocation5 + $0x5f4] ss:$8 sps:$4 sm:$0xff]  }
  0x8a   :  { %1761 = vmatpush2.bf16.msra.mxu0 %v2771_v0  ;;  %v2849_v0 = vld [vmem:[#allocation5 + $0x4f0] ss:$8 sps:$4 sm:$0xff]  }
  0x8b   :  { %1804 = vmatpush2.bf16.msra.mxu1 %v2774_v1  ;;  %1762 = vmatprep.subr.bf16.mxu0 %v2779_v2  ;;  %v2852_v1 = vld [vmem:[#allocation5 + $0x5f0] ss:$8 sps:$4 sm:$0xff]   ;;  %v2857_v2 = vld [vmem:[#allocation5 + $0x4e4] ss:$8 sps:$4 sm:$0xff]  }
  0x8c   :  { %1805 = vmatprep.subr.bf16.mxu1 %v2782_v3  ;;  %v2860_v3 = vld [vmem:[#allocation5 + $0x5e4] ss:$8 sps:$4 sm:$0xff]  }
  0x8e   :  { %1763 = vmatpush2.bf16.msra.mxu0 %v2777_v4  ;;  %v2855_v4 = vld [vmem:[#allocation5 + $0x4e0] ss:$8 sps:$4 sm:$0xff]  }
  0x8f   :  { %1806 = vmatpush2.bf16.msra.mxu1 %v2780_v5  ;;  %1764 = vmatprep.subr.bf16.mxu0 %v2785_v6  ;;  %v2858_v5 = vld [vmem:[#allocation5 + $0x5e0] ss:$8 sps:$4 sm:$0xff]   ;;  %v2863_v6 = vld [vmem:[#allocation5 + $0x4d4] ss:$8 sps:$4 sm:$0xff]  }
  0x90   :  { %1807 = vmatprep.subr.bf16.mxu1 %v2788_v7  ;;  %v2866_v7 = vld [vmem:[#allocation5 + $0x5d4] ss:$8 sps:$4 sm:$0xff]  }
  0x92   :  { %1765 = vmatpush2.bf16.msra.mxu0 %v2783_v8  ;;  %v2861_v8 = vld [vmem:[#allocation5 + $0x4d0] ss:$8 sps:$4 sm:$0xff]  }
  0x93   :  { %1808 = vmatpush2.bf16.msra.mxu1 %v2786_v9  ;;  %1766 = vmatprep.subr.bf16.mxu0 %v2791_v10  ;;  %v2864_v9 = vld [vmem:[#allocation5 + $0x5d0] ss:$8 sps:$4 sm:$0xff]   ;;  %v2869_v10 = vld [vmem:[#allocation5 + $0x4c4] ss:$8 sps:$4 sm:$0xff]  }
  0x94   :  { %1809 = vmatprep.subr.bf16.mxu1 %v2794_v11  ;;  %v2872_v11 = vld [vmem:[#allocation5 + $0x5c4] ss:$8 sps:$4 sm:$0xff]  }
  0x96   :  { %1767 = vmatpush2.bf16.msra.mxu0 %v2789_v12  ;;  %v2867_v12 = vld [vmem:[#allocation5 + $0x4c0] ss:$8 sps:$4 sm:$0xff]  }
  0x97   :  { %1810 = vmatpush2.bf16.msra.mxu1 %v2792_v13  ;;  %1768 = vmatprep.subr.bf16.mxu0 %v2797_v14  ;;  %v2870_v13 = vld [vmem:[#allocation5 + $0x5c0] ss:$8 sps:$4 sm:$0xff]   ;;  %v2875_v14 = vld [vmem:[#allocation5 + $0x4b4] ss:$8 sps:$4 sm:$0xff]  }
  0x98   :  { %1811 = vmatprep.subr.bf16.mxu1 %v2800_v15  ;;  %v2878_v15 = vld [vmem:[#allocation5 + $0x5b4] ss:$8 sps:$4 sm:$0xff]  }
  0x9a   :  { %1769 = vmatpush2.bf16.msra.mxu0 %v2795_v16  ;;  %v2873_v16 = vld [vmem:[#allocation5 + $0x4b0] ss:$8 sps:$4 sm:$0xff]  }
  0x9b   :  { %1812 = vmatpush2.bf16.msra.mxu1 %v2798_v17  ;;  %1824 = vmatprep.subr.bf16.mxu0 %v2803_v22  ;;  %v2876_v17 = vld [vmem:[#allocation5 + $0x5b0] ss:$8 sps:$4 sm:$0xff]   ;;  %v2887_v22 = vld [vmem:[#allocation5 + $0x494] ss:$8 sps:$4 sm:$0xff]  }
  0x9c   :  { %1867 = vmatprep.subr.bf16.mxu1 %v2806_v23  ;;  %v2890_v23 = vld [vmem:[#allocation5 + $0x594] ss:$8 sps:$4 sm:$0xff]  }
  0x9d   :  { %1771 = vmatmul.mubr.bf16.vlgmr.msra.gmra.mxu0 %v92_v24  ;;  %v2885_v24 = vld [vmem:[#allocation5 + $0x490] ss:$8 sps:$4 sm:$0xff]  }
  0x9e   :  { %1814 = vmatmul.mubr.bf16.vlgmr.msra.gmra.mxu1 %v94_v25  ;;  %1825 = vmatpush1.bf16.msra.mxu0 %v2801_v26  ;;  %v2888_v25 = vld [vmem:[#allocation5 + $0x590] ss:$8 sps:$4 sm:$0xff]   ;;  %v2893_v26 = vld [vmem:[#allocation5 + $0x484] ss:$8 sps:$4 sm:$0xff]  }
  0x9f   :  { %1868 = vmatpush1.bf16.msra.mxu1 %v2804_v27  ;;  %1826 = vmatprep.subr.bf16.mxu0 %v2809_v28  ;;  %v2896_v27 = vld [vmem:[#allocation5 + $0x584] ss:$8 sps:$4 sm:$0xff]   ;;  %v2891_v28 = vld [vmem:[#allocation5 + $0x480] ss:$8 sps:$4 sm:$0xff]  }
  0xa0   :  { %1869 = vmatprep.subr.bf16.mxu1 %v2812_v29  ;;  %1856 = vmatprep.mubr.bf16.mxu0 %v97_v36  ;;  %v2894_v29 = vld [vmem:[#allocation5 + $0x580] ss:$8 sps:$4 sm:$0xff]  }
  0xa1   :  { %1899 = vmatprep.mubr.bf16.mxu1 %v99_v41  ;;  %v69_v36 = vld [vmem:[%s3353_s1 + $0x68] sm:$0xff] }
  0xa2   :  { %1827 = vmatpush1.bf16.msra.mxu0 %v2807_v30  ;;  %v64_v30 = vld [vmem:[%s3353_s1 + $0x40] sm:$0xff] }
  0xa3   :  { %1870 = vmatpush1.bf16.msra.mxu1 %v2810_v31  ;;  %1828 = vmatprep.subr.bf16.mxu0 %v2815_v32  ;;  %v80_v31 = vld [vmem:[%s3353_s1 + $0xc0] sm:$0xff]  ;;  %v66_v32 = vld [vmem:[%s3353_s1 + $0x50] sm:$0xff] }
  0xa4   :  { %1871 = vmatprep.subr.bf16.mxu1 %v2818_v33  ;;  %v82_v33 = vld [vmem:[%s3353_s1 + $0xd0] sm:$0xff] }
  0xa5   :  { %v98_v41 = vpack.c.bf16 %v82_v33, %v66_v32  ;;  %v2975_v32 = vld [vmem:[#allocation5 + $0x6a0] ss:$8 sps:$4 sm:$0xff]  }
  0xa6   :  { %1829 = vmatpush1.bf16.msra.mxu0 %v2813_v39  ;;  %v87_v39 = vld [vmem:[%s3353_s1 + $0xf8] sm:$0xff]  ;;  %v2978_v33 = vld [vmem:[#allocation5 + $0x7a0] ss:$8 sps:$4 sm:$0xff]  }
  0xa7   :  { %1872 = vmatpush1.bf16.msra.mxu1 %v2816_v40  ;;  %1830 = vmatprep.subr.bf16.mxu0 %v2821_v42  ;;  %v96_v40 = vpack.c.bf16 %v80_v31, %v64_v30  ;;  %v2897_v42 = vld [vmem:[#allocation5 + $0x670] ss:$8 sps:$4 sm:$0xff]   ;;  %v2977_v30 = vld [vmem:[#allocation5 + $0x6a4] ss:$8 sps:$4 sm:$0xff]  }
  0xa8   :  { %1873 = vmatprep.subr.bf16.mxu1 %v2824_v43  ;;  %v2900_v43 = vld [vmem:[#allocation5 + $0x770] ss:$8 sps:$4 sm:$0xff]   ;;  %v2980_v31 = vld [vmem:[#allocation5 + $0x7a4] ss:$8 sps:$4 sm:$0xff]  }
  0xaa   :  { %1831 = vmatpush1.bf16.msra.mxu0 %v2819_v44  ;;  %v2905_v44 = vld [vmem:[#allocation5 + $0x664] ss:$8 sps:$4 sm:$0xff]  }
  0xab   :  { %1874 = vmatpush1.bf16.msra.mxu1 %v2822_v45  ;;  %1832 = vmatprep.subr.bf16.mxu0 %v2827_v46  ;;  %v2908_v45 = vld [vmem:[#allocation5 + $0x764] ss:$8 sps:$4 sm:$0xff]   ;;  %v101_v46 = vpack.c.bf16 %v85_v37, %v69_v36  ;;  %v2981_v36 = vld [vmem:[#allocation5 + $0x690] ss:$8 sps:$4 sm:$0xff]  }
  0xac   :  { %1875 = vmatprep.subr.bf16.mxu1 %v2830_v47  ;;  %v103_v47 = vpack.c.bf16 %v87_v39, %v71_v38  ;;  %v2984_v37 = vld [vmem:[#allocation5 + $0x790] ss:$8 sps:$4 sm:$0xff]   ;;  %v2989_v38 = vld [vmem:[#allocation5 + $0x684] ss:$8 sps:$4 sm:$0xff]  }
  0xad   :  { %v2992_v39 = vld [vmem:[#allocation5 + $0x784] ss:$8 sps:$4 sm:$0xff]  }
  0xae   :  { %1833 = vmatpush1.bf16.msra.mxu0 %v2825_v48  ;;  %v2903_v48 = vld [vmem:[#allocation5 + $0x660] ss:$8 sps:$4 sm:$0xff]  }
  0xaf   :  { %1876 = vmatpush1.bf16.msra.mxu1 %v2828_v49  ;;  %1834 = vmatprep.subr.bf16.mxu0 %v2833_v50  ;;  %v2906_v49 = vld [vmem:[#allocation5 + $0x760] ss:$8 sps:$4 sm:$0xff]   ;;  %v2911_v50 = vld [vmem:[#allocation5 + $0x654] ss:$8 sps:$4 sm:$0xff]  }
  0xb0   :  { %1877 = vmatprep.subr.bf16.mxu1 %v2836_v51  ;;  %v2914_v51 = vld [vmem:[#allocation5 + $0x754] ss:$8 sps:$4 sm:$0xff]  }
  0xb2   :  { %1835 = vmatpush1.bf16.msra.mxu0 %v2831_v52  ;;  %v2909_v52 = vld [vmem:[#allocation5 + $0x650] ss:$8 sps:$4 sm:$0xff]  }
  0xb3   :  { %1878 = vmatpush1.bf16.msra.mxu1 %v2834_v53  ;;  %1836 = vmatprep.subr.bf16.mxu0 %v2839_v54  ;;  %v2912_v53 = vld [vmem:[#allocation5 + $0x750] ss:$8 sps:$4 sm:$0xff]   ;;  %v2917_v54 = vld [vmem:[#allocation5 + $0x644] ss:$8 sps:$4 sm:$0xff]  }
  0xb4   :  { %1879 = vmatprep.subr.bf16.mxu1 %v2842_v55  ;;  %v2920_v55 = vld [vmem:[#allocation5 + $0x744] ss:$8 sps:$4 sm:$0xff]  }
  0xb6   :  { %1837 = vmatpush1.bf16.msra.mxu0 %v2837_v56  ;;  %v2915_v56 = vld [vmem:[#allocation5 + $0x640] ss:$8 sps:$4 sm:$0xff]  }
  0xb7   :  { %1880 = vmatpush1.bf16.msra.mxu1 %v2840_v57  ;;  %1838 = vmatprep.subr.bf16.mxu0 %v2845_v58  ;;  %v2918_v57 = vld [vmem:[#allocation5 + $0x740] ss:$8 sps:$4 sm:$0xff]   ;;  %v2923_v58 = vld [vmem:[#allocation5 + $0x634] ss:$8 sps:$4 sm:$0xff]  }
  0xb8   :  { %1881 = vmatprep.subr.bf16.mxu1 %v2848_v59  ;;  %v2926_v59 = vld [vmem:[#allocation5 + $0x734] ss:$8 sps:$4 sm:$0xff]  }
  0xba   :  { %1839 = vmatpush1.bf16.msra.mxu0 %v2843_v60  ;;  %v2921_v60 = vld [vmem:[#allocation5 + $0x630] ss:$8 sps:$4 sm:$0xff]  }
  0xbb   :  { %1882 = vmatpush1.bf16.msra.mxu1 %v2846_v61  ;;  %1840 = vmatprep.subr.bf16.mxu0 %v2851_v62  ;;  %v2924_v61 = vld [vmem:[#allocation5 + $0x730] ss:$8 sps:$4 sm:$0xff]   ;;  %v2929_v62 = vld [vmem:[#allocation5 + $0x624] ss:$8 sps:$4 sm:$0xff]  }
  0xbc   :  { %1883 = vmatprep.subr.bf16.mxu1 %v2854_v63  ;;  %v2932_v63 = vld [vmem:[#allocation5 + $0x724] ss:$8 sps:$4 sm:$0xff]  }
  0xbe   :  { %1841 = vmatpush2.bf16.msra.mxu0 %v2849_v0  ;;  %v2927_v0 = vld [vmem:[#allocation5 + $0x620] ss:$8 sps:$4 sm:$0xff]  }
  0xbf   :  { %1884 = vmatpush2.bf16.msra.mxu1 %v2852_v1  ;;  %1842 = vmatprep.subr.bf16.mxu0 %v2857_v2  ;;  %v2930_v1 = vld [vmem:[#allocation5 + $0x720] ss:$8 sps:$4 sm:$0xff]   ;;  %v2935_v2 = vld [vmem:[#allocation5 + $0x614] ss:$8 sps:$4 sm:$0xff]  }
  0xc0   :  { %1885 = vmatprep.subr.bf16.mxu1 %v2860_v3  ;;  %v2938_v3 = vld [vmem:[#allocation5 + $0x714] ss:$8 sps:$4 sm:$0xff]  }
  0xc2   :  { %1843 = vmatpush2.bf16.msra.mxu0 %v2855_v4  ;;  %v2933_v4 = vld [vmem:[#allocation5 + $0x610] ss:$8 sps:$4 sm:$0xff]  }
  0xc3   :  { %1886 = vmatpush2.bf16.msra.mxu1 %v2858_v5  ;;  %1844 = vmatprep.subr.bf16.mxu0 %v2863_v6  ;;  %v2936_v5 = vld [vmem:[#allocation5 + $0x710] ss:$8 sps:$4 sm:$0xff]   ;;  %v2941_v6 = vld [vmem:[#allocation5 + $0x604] ss:$8 sps:$4 sm:$0xff]  }
  0xc4   :  { %1887 = vmatprep.subr.bf16.mxu1 %v2866_v7  ;;  %v2944_v7 = vld [vmem:[#allocation5 + $0x704] ss:$8 sps:$4 sm:$0xff]  }
  0xc6   :  { %1845 = vmatpush2.bf16.msra.mxu0 %v2861_v8  ;;  %v2939_v8 = vld [vmem:[#allocation5 + $0x600] ss:$8 sps:$4 sm:$0xff]  }
  0xc7   :  { %1888 = vmatpush2.bf16.msra.mxu1 %v2864_v9  ;;  %1846 = vmatprep.subr.bf16.mxu0 %v2869_v10  ;;  %v2942_v9 = vld [vmem:[#allocation5 + $0x700] ss:$8 sps:$4 sm:$0xff]   ;;  %v2947_v10 = vld [vmem:[#allocation5 + $0x6f4] ss:$8 sps:$4 sm:$0xff]  }
  0xc8   :  { %1889 = vmatprep.subr.bf16.mxu1 %v2872_v11  ;;  %v2950_v11 = vld [vmem:[#allocation5 + $0x7f4] ss:$8 sps:$4 sm:$0xff]  }
  0xca   :  { %1847 = vmatpush2.bf16.msra.mxu0 %v2867_v12  ;;  %v2945_v12 = vld [vmem:[#allocation5 + $0x6f0] ss:$8 sps:$4 sm:$0xff]  }
  0xcb   :  { %1890 = vmatpush2.bf16.msra.mxu1 %v2870_v13  ;;  %1848 = vmatprep.subr.bf16.mxu0 %v2875_v14  ;;  %v2948_v13 = vld [vmem:[#allocation5 + $0x7f0] ss:$8 sps:$4 sm:$0xff]   ;;  %v2953_v14 = vld [vmem:[#allocation5 + $0x6e4] ss:$8 sps:$4 sm:$0xff]  }
  0xcc   :  { %1891 = vmatprep.subr.bf16.mxu1 %v2878_v15  ;;  %v2956_v15 = vld [vmem:[#allocation5 + $0x7e4] ss:$8 sps:$4 sm:$0xff]  }
  0xce   :  { %1849 = vmatpush2.bf16.msra.mxu0 %v2873_v16  ;;  %v2951_v16 = vld [vmem:[#allocation5 + $0x6e0] ss:$8 sps:$4 sm:$0xff]  }
  0xcf   :  { %1892 = vmatpush2.bf16.msra.mxu1 %v2876_v17  ;;  %1850 = vmatprep.subr.bf16.mxu0 %v2881_v18  ;;  %v2954_v17 = vld [vmem:[#allocation5 + $0x7e0] ss:$8 sps:$4 sm:$0xff]   ;;  %v2959_v18 = vld [vmem:[#allocation5 + $0x6d4] ss:$8 sps:$4 sm:$0xff]  }
  0xd0   :  { %1893 = vmatprep.subr.bf16.mxu1 %v2884_v19  ;;  %v2962_v19 = vld [vmem:[#allocation5 + $0x7d4] ss:$8 sps:$4 sm:$0xff]  }
  0xd2   :  { %1851 = vmatpush2.bf16.msra.mxu0 %v2879_v20  ;;  %v2957_v20 = vld [vmem:[#allocation5 + $0x6d0] ss:$8 sps:$4 sm:$0xff]  }
  0xd3   :  { %1894 = vmatpush2.bf16.msra.mxu1 %v2882_v21  ;;  %1852 = vmatprep.subr.bf16.mxu0 %v2887_v22  ;;  %v2960_v21 = vld [vmem:[#allocation5 + $0x7d0] ss:$8 sps:$4 sm:$0xff]   ;;  %v2965_v22 = vld [vmem:[#allocation5 + $0x6c4] ss:$8 sps:$4 sm:$0xff]  }
  0xd4   :  { %1895 = vmatprep.subr.bf16.mxu1 %v2890_v23  ;;  %v2968_v23 = vld [vmem:[#allocation5 + $0x7c4] ss:$8 sps:$4 sm:$0xff]  }
  0xd6   :  { %1853 = vmatpush2.bf16.msra.mxu0 %v2885_v24  ;;  %v2963_v24 = vld [vmem:[#allocation5 + $0x6c0] ss:$8 sps:$4 sm:$0xff]  }
  0xd7   :  { %1896 = vmatpush2.bf16.msra.mxu1 %v2888_v25  ;;  %1854 = vmatprep.subr.bf16.mxu0 %v2893_v26  ;;  %v2966_v25 = vld [vmem:[#allocation5 + $0x7c0] ss:$8 sps:$4 sm:$0xff]   ;;  %v2971_v26 = vld [vmem:[#allocation5 + $0x6b4] ss:$8 sps:$4 sm:$0xff]  }
  0xd8   :  { %1897 = vmatprep.subr.bf16.mxu1 %v2896_v27  ;;  %v2974_v27 = vld [vmem:[#allocation5 + $0x7b4] ss:$8 sps:$4 sm:$0xff]  }
  0xda   :  { %1855 = vmatpush2.bf16.msra.mxu0 %v2891_v28  ;;  %v2969_v28 = vld [vmem:[#allocation5 + $0x6b0] ss:$8 sps:$4 sm:$0xff]  }
  0xdb   :  { %1898 = vmatpush2.bf16.msra.mxu1 %v2894_v29  ;;  %1910 = vmatprep.subr.bf16.mxu0 %v2899_v34  ;;  %v2972_v29 = vld [vmem:[#allocation5 + $0x7b0] ss:$8 sps:$4 sm:$0xff]   ;;  %v2983_v34 = vld [vmem:[#allocation5 + $0x694] ss:$8 sps:$4 sm:$0xff]  }
  0xdc   :  { %1953 = vmatprep.subr.bf16.mxu1 %v2902_v35  ;;  %v2986_v35 = vld [vmem:[#allocation5 + $0x794] ss:$8 sps:$4 sm:$0xff]  }
  0xdd   :  { %1857 = vmatmul.mubr.bf16.vlgmr.msra.gmra.mxu0 %v96_v40  ;;  %v2987_v40 = vld [vmem:[#allocation5 + $0x680] ss:$8 sps:$4 sm:$0xff]  }
  0xde   :  { %1900 = vmatmul.mubr.bf16.vlgmr.msra.gmra.mxu1 %v98_v41  ;;  %1911 = vmatpush1.bf16.msra.mxu0 %v2897_v42  ;;  %v2990_v41 = vld [vmem:[#allocation5 + $0x780] ss:$8 sps:$4 sm:$0xff]  }
  0xdf   :  { %1954 = vmatpush1.bf16.msra.mxu1 %v2900_v43  ;;  %1912 = vmatprep.subr.bf16.mxu0 %v2905_v44  ;;  %v68_v42 = vld [vmem:[%s3353_s1 + $0x60] sm:$0xff]  ;;  %v70_v44 = vld [vmem:[%s3353_s1 + $0x70] sm:$0xff] }
  0xe0   :  { %1955 = vmatprep.subr.bf16.mxu1 %v2908_v45  ;;  %1942 = vmatprep.mubr.bf16.mxu0 %v101_v46  ;;  %v84_v43 = vld [vmem:[%s3353_s1 + $0xe0] sm:$0xff]  ;;  %v86_v45 = vld [vmem:[%s3353_s1 + $0xf0] sm:$0xff] }
  0xe1   :  { %1985 = vmatprep.mubr.bf16.mxu1 %v103_v47  ;;  %v100_v46 = vpack.c.bf16 %v84_v43, %v68_v42  ;;  %v102_v47 = vpack.c.bf16 %v86_v45, %v70_v44 }
  0xe2   :  { %1913 = vmatpush1.bf16.msra.mxu0 %v2903_v48  ;;  %v2993_v48 = vld [vmem:[%s3356_s4 + $0x70] ss:$8 sps:$4 sm:$0xff]  }
  0xe3   :  { %1956 = vmatpush1.bf16.msra.mxu1 %v2906_v49  ;;  %1914 = vmatprep.subr.bf16.mxu0 %v2911_v50  ;;  %v2995_v49 = vld [vmem:[%s3356_s4 + $0x74] ss:$8 sps:$4 sm:$0xff]   ;;  %v2998_v50 = vld [vmem:[%s3356_s4 + $0x64] ss:$8 sps:$4 sm:$0xff]  }
  0xe4   :  { %1957 = vmatprep.subr.bf16.mxu1 %v2914_v51  ;;  %v2996_v51 = vld [vmem:[%s3356_s4 + $0x60] ss:$8 sps:$4 sm:$0xff]  }
  0xe6   :  { %1915 = vmatpush1.bf16.msra.mxu0 %v2909_v52  ;;  %v3001_v52 = vld [vmem:[%s3356_s4 + $0x54] ss:$8 sps:$4 sm:$0xff]  }
  0xe7   :  { %1958 = vmatpush1.bf16.msra.mxu1 %v2912_v53  ;;  %1916 = vmatprep.subr.bf16.mxu0 %v2917_v54  ;;  %v2999_v53 = vld [vmem:[%s3356_s4 + $0x50] ss:$8 sps:$4 sm:$0xff]   ;;  %v3004_v54 = vld [vmem:[%s3356_s4 + $0x44] ss:$8 sps:$4 sm:$0xff]  }
  0xe8   :  { %1959 = vmatprep.subr.bf16.mxu1 %v2920_v55  ;;  %v3002_v55 = vld [vmem:[%s3356_s4 + $0x40] ss:$8 sps:$4 sm:$0xff]  }
  0xea   :  { %1917 = vmatpush1.bf16.msra.mxu0 %v2915_v56  ;;  %v3007_v56 = vld [vmem:[%s3356_s4 + $0x34] ss:$8 sps:$4 sm:$0xff]  }
  0xeb   :  { %1960 = vmatpush1.bf16.msra.mxu1 %v2918_v57  ;;  %1918 = vmatprep.subr.bf16.mxu0 %v2923_v58  ;;  %v3005_v57 = vld [vmem:[%s3356_s4 + $0x30] ss:$8 sps:$4 sm:$0xff]   ;;  %v3010_v58 = vld [vmem:[%s3356_s4 + $0x24] ss:$8 sps:$4 sm:$0xff]  }
  0xec   :  { %1961 = vmatprep.subr.bf16.mxu1 %v2926_v59  ;;  %v3008_v59 = vld [vmem:[%s3356_s4 + $0x20] ss:$8 sps:$4 sm:$0xff]  }
  0xee   :  { %1919 = vmatpush1.bf16.msra.mxu0 %v2921_v60  ;;  %v3013_v60 = vld [vmem:[%s3356_s4 + $0x14] ss:$8 sps:$4 sm:$0xff]  }
  0xef   :  { %1962 = vmatpush1.bf16.msra.mxu1 %v2924_v61  ;;  %1920 = vmatprep.subr.bf16.mxu0 %v2929_v62  ;;  %v3011_v61 = vld [vmem:[%s3356_s4 + $0x10] ss:$8 sps:$4 sm:$0xff]   ;;  %v3016_v62 = vld [vmem:[%s3356_s4 + $0x4] ss:$8 sps:$4 sm:$0xff]  }
  0xf0   :  { %1963 = vmatprep.subr.bf16.mxu1 %v2932_v63  ;;  %v3014_v63 = vld [vmem:[%s3356_s4] ss:$8 sps:$4 sm:$0xff]  }
  0xf2   :  { %1921 = vmatpush1.bf16.msra.mxu0 %v2927_v0  ;;  %v3019_v0 = vld [vmem:[%s3356_s4 + $0xf4] ss:$8 sps:$4 sm:$0xff]  }
  0xf3   :  { %1964 = vmatpush1.bf16.msra.mxu1 %v2930_v1  ;;  %1922 = vmatprep.subr.bf16.mxu0 %v2935_v2  ;;  %v3017_v1 = vld [vmem:[%s3356_s4 + $0xf0] ss:$8 sps:$4 sm:$0xff]   ;;  %v3022_v2 = vld [vmem:[%s3356_s4 + $0xe4] ss:$8 sps:$4 sm:$0xff]  }
  0xf4   :  { %1965 = vmatprep.subr.bf16.mxu1 %v2938_v3  ;;  %v3020_v3 = vld [vmem:[%s3356_s4 + $0xe0] ss:$8 sps:$4 sm:$0xff]  }
  0xf6   :  { %1923 = vmatpush1.bf16.msra.mxu0 %v2933_v4  ;;  %v3025_v4 = vld [vmem:[%s3356_s4 + $0xd4] ss:$8 sps:$4 sm:$0xff]  }
  0xf7   :  { %1966 = vmatpush1.bf16.msra.mxu1 %v2936_v5  ;;  %1924 = vmatprep.subr.bf16.mxu0 %v2941_v6  ;;  %v3023_v5 = vld [vmem:[%s3356_s4 + $0xd0] ss:$8 sps:$4 sm:$0xff]   ;;  %v3028_v6 = vld [vmem:[%s3356_s4 + $0xc4] ss:$8 sps:$4 sm:$0xff]  }
  0xf8   :  { %1967 = vmatprep.subr.bf16.mxu1 %v2944_v7  ;;  %v3026_v7 = vld [vmem:[%s3356_s4 + $0xc0] ss:$8 sps:$4 sm:$0xff]  }
  0xfa   :  { %1925 = vmatpush1.bf16.msra.mxu0 %v2939_v8  ;;  %v3031_v8 = vld [vmem:[%s3356_s4 + $0xb4] ss:$8 sps:$4 sm:$0xff]  }
  0xfb   :  { %1968 = vmatpush1.bf16.msra.mxu1 %v2942_v9  ;;  %1926 = vmatprep.subr.bf16.mxu0 %v2947_v10  ;;  %v3029_v9 = vld [vmem:[%s3356_s4 + $0xb0] ss:$8 sps:$4 sm:$0xff]   ;;  %v3034_v10 = vld [vmem:[%s3356_s4 + $0xa4] ss:$8 sps:$4 sm:$0xff]  }
  0xfc   :  { %1969 = vmatprep.subr.bf16.mxu1 %v2950_v11  ;;  %v3032_v11 = vld [vmem:[%s3356_s4 + $0xa0] ss:$8 sps:$4 sm:$0xff]  }
  0xfe   :  { %1927 = vmatpush2.bf16.msra.mxu0 %v2945_v12  ;;  %v3037_v12 = vld [vmem:[%s3356_s4 + $0x94] ss:$8 sps:$4 sm:$0xff]  }
  0xff   :  { %1970 = vmatpush2.bf16.msra.mxu1 %v2948_v13  ;;  %1928 = vmatprep.subr.bf16.mxu0 %v2953_v14  ;;  %v3035_v13 = vld [vmem:[%s3356_s4 + $0x90] ss:$8 sps:$4 sm:$0xff]   ;;  %v3038_v14 = vld [vmem:[%s3356_s4 + $0x80] ss:$8 sps:$4 sm:$0xff]  }
 0x100   :  { %1971 = vmatprep.subr.bf16.mxu1 %v2956_v15  ;;  %v3040_v15 = vld [vmem:[%s3356_s4 + $0x84] ss:$8 sps:$4 sm:$0xff]  }
 0x102   :  { %1929 = vmatpush2.bf16.msra.mxu0 %v2951_v16 }
 0x103   :  { %1972 = vmatpush2.bf16.msra.mxu1 %v2954_v17  ;;  %1930 = vmatprep.subr.bf16.mxu0 %v2959_v18 }
 0x104   :  { %1973 = vmatprep.subr.bf16.mxu1 %v2962_v19 }
 0x106   :  { %1931 = vmatpush2.bf16.msra.mxu0 %v2957_v20 }
 0x107   :  { %1974 = vmatpush2.bf16.msra.mxu1 %v2960_v21  ;;  %1932 = vmatprep.subr.bf16.mxu0 %v2965_v22  ;;  %v362_v22 = vlaneseq }
 0x108   :  { %1975 = vmatprep.subr.bf16.mxu1 %v2968_v23 }
 0x10a   :  { %1933 = vmatpush2.bf16.msra.mxu0 %v2963_v24 }
 0x10b   :  { %1976 = vmatpush2.bf16.msra.mxu1 %v2966_v25  ;;  %1934 = vmatprep.subr.bf16.mxu0 %v2971_v26 }
 0x10c   :  { %1977 = vmatprep.subr.bf16.mxu1 %v2974_v27  ;;  %v363_v27 = vshrl.u32 %v362_v22, 7 }
 0x10e   :  { %1935 = vmatpush2.bf16.msra.mxu0 %v2969_v28 }
 0x10f   :  { %1978 = vmatpush2.bf16.msra.mxu1 %v2972_v29  ;;  %1936 = vmatprep.subr.bf16.mxu0 %v2977_v30  ;;  %v3327_v30 = vsub.s32 0, %v363_v27 }
 0x110   :  { %1979 = vmatprep.subr.bf16.mxu1 %v2980_v31  ;;  %v3329_v31 = vsub.s32 1, %v363_v27 }
 0x112   :  { %1937 = vmatpush2.bf16.msra.mxu0 %v2975_v32  ;;  %v360_v32 = vld [vmem:[%s3355_s3] sm:$0x3]  ;;  %s53_s3 = sld [smem:[#allocation2]] }
 0x113   :  { %1980 = vmatpush2.bf16.msra.mxu1 %v2978_v33  ;;  %1938 = vmatprep.subr.bf16.mxu0 %v2983_v34 }
 0x114   :  { %1981 = vmatprep.subr.bf16.mxu1 %v2986_v35  ;;  %v365_v35 = vrot.slane %v360_v32, %v3327_v30 }
 0x116   :  { %1939 = vmatpush2.bf16.msra.mxu0 %v2981_v36  ;;  %v369_v36 = vrot.slane %v360_v32, %v3329_v31 }
 0x117   :  { %1982 = vmatpush2.bf16.msra.mxu1 %v2984_v37  ;;  %1940 = vmatprep.subr.bf16.mxu0 %v2989_v38 }
 0x118   :  { %1983 = vmatprep.subr.bf16.mxu1 %v2992_v39 }
 0x11a   :  { %1941 = vmatpush2.bf16.msra.mxu0 %v2987_v40 }
 0x11b   :  { %1984 = vmatpush2.bf16.msra.mxu1 %v2990_v41  ;;  %2215 = vmatprep.subr.bf16.mxu0 %v2995_v49 }
 0x11d   :  { %1943 = vmatmul.mubr.bf16.vlgmr.msra.gmra.mxu0 %v100_v46  ;;  %v1686_v16 = vpop.f32.mrf.mxu0 }
 0x11e   :  { %1986 = vmatmul.mubr.bf16.vlgmr.msra.gmra.mxu1 %v102_v47  ;;  %2216 = vmatpush1.bf16.msra.mxu0 %v2993_v48  ;;  %v1729_v17 = vpop.f32.mrf.mxu1  ;;  %v1687_v39 = vadd.f32 %v1686_v16, %v365_v35 }
 0x11f   :  { %2217 = vmatprep.subr.bf16.mxu0 %v2998_v50  ;;  %v1688_v18 = vpop.f32.mrf.mxu0 }
 0x120   :  { %v1731_v19 = vpop.f32.mrf.mxu1  ;;  %v1689_v40 = vadd.f32 %v1688_v18, %v369_v36  ;;  %v1730_v44 = vadd.f32 %v1729_v17, %v1687_v39 }
 0x121   :  { %v1690_v20 = vpop.f32.mrf.mxu0 }
 0x122   :  { %2218 = vmatpush1.bf16.msra.mxu0 %v2996_v51  ;;  %v1733_v21 = vpop.f32.mrf.mxu1  ;;  %v1691_v43 = vadd.f32 %v1690_v20, %v365_v35  ;;  %v1732_v45 = vadd.f32 %v1731_v19, %v1689_v40  ;;  %v2000_v20 = vstv %s53_s3  ;;  %v2262_v40 = vstv %s2315_s12 }
 0x123   :  { %2219 = vmatprep.subr.bf16.mxu0 %v3001_v52  ;;  %v1692_v23 = vpop.f32.mrf.mxu0 }
 0x124   :  { %v1735_v24 = vpop.f32.mrf.mxu1  ;;  %v1693_v46 = vadd.f32 %v1692_v23, %v369_v36  ;;  %v1734_v49 = vadd.f32 %v1733_v21, %v1691_v43  ;;  %v2043_v36 = vld [vmem:[%s3357_s5] sm:$0x3]  ;;  %s2316_s5 = sld [smem:[#allocation2 + $0x2]] }
 0x126   :  { %2220 = vmatpush1.bf16.msra.mxu0 %v2999_v53  ;;  %v1736_v53 = vadd.f32 %v1735_v24, %v1693_v46 }
 0x127   :  { %2221 = vmatprep.subr.bf16.mxu0 %v3004_v54 }
 0x12a   :  { %2222 = vmatpush1.bf16.msra.mxu0 %v3002_v55 }
 0x12b   :  { %2223 = vmatprep.subr.bf16.mxu0 %v3007_v56 }
 0x12e   :  { %2224 = vmatpush1.bf16.msra.mxu0 %v3005_v57 }
 0x12f   :  { %2225 = vmatprep.subr.bf16.mxu0 %v3010_v58 }
 0x132   :  { %2226 = vmatpush1.bf16.msra.mxu0 %v3008_v59 }
 0x133   :  { %2227 = vmatprep.subr.bf16.mxu0 %v3013_v60 }
 0x136   :  { %2228 = vmatpush1.bf16.msra.mxu0 %v3011_v61 }
 0x137   :  { %2229 = vmatprep.subr.bf16.mxu0 %v3016_v62 }
 0x13a   :  { %2230 = vmatpush1.bf16.msra.mxu0 %v3014_v63 }
 0x13b   :  { %2231 = vmatprep.subr.bf16.mxu0 %v3019_v0 }
 0x13e   :  { %2232 = vmatpush2.bf16.msra.mxu0 %v3017_v1 }
 0x13f   :  { %2233 = vmatprep.subr.bf16.mxu0 %v3022_v2 }
 0x142   :  { %2234 = vmatpush2.bf16.msra.mxu0 %v3020_v3 }
 0x143   :  { %2235 = vmatprep.subr.bf16.mxu0 %v3025_v4 }
 0x146   :  { %2236 = vmatpush2.bf16.msra.mxu0 %v3023_v5 }
 0x147   :  { %2237 = vmatprep.subr.bf16.mxu0 %v3028_v6 }
 0x14a   :  { %2238 = vmatpush2.bf16.msra.mxu0 %v3026_v7 }
 0x14b   :  { %2239 = vmatprep.subr.bf16.mxu0 %v3031_v8 }
 0x14e   :  { %2240 = vmatpush2.bf16.msra.mxu0 %v3029_v9 }
 0x14f   :  { %2241 = vmatprep.subr.bf16.mxu0 %v3034_v10 }
 0x152   :  { %2242 = vmatpush2.bf16.msra.mxu0 %v3032_v11 }
 0x153   :  { %2243 = vmatprep.subr.bf16.mxu0 %v3037_v12 }
 0x156   :  { %2244 = vmatpush2.bf16.msra.mxu0 %v3035_v13 }
 0x157   :  { %2245 = vmatprep.subr.bf16.mxu0 %v3040_v15 }
 0x15a   :  { %2246 = vmatpush2.bf16.msra.mxu0 %v3038_v14 }
 0x15d   :  { %v1772_v25 = vpop.f32.mrf.mxu0 }
 0x15e   :  { %v1815_v26 = vpop.f32.mrf.mxu1  ;;  %v1773_v50 = vadd.f32 %v1772_v25, %v1730_v44 }
 0x15f   :  { %v1774_v28 = vpop.f32.mrf.mxu0 }
 0x160   :  { %v1817_v29 = vpop.f32.mrf.mxu1  ;;  %v1775_v51 = vadd.f32 %v1774_v28, %v1732_v45  ;;  %v1816_v56 = vadd.f32 %v1815_v26, %v1773_v50 }
 0x161   :  { %v1776_v33 = vpop.f32.mrf.mxu0 }
 0x162   :  { %v1819_v34 = vpop.f32.mrf.mxu1  ;;  %v1777_v52 = vadd.f32 %v1776_v33, %v1734_v49  ;;  %v1818_v57 = vadd.f32 %v1817_v29, %v1775_v51 }
 0x163   :  { %v1778_v37 = vpop.f32.mrf.mxu0 }
 0x164   :  { %v1821_v38 = vpop.f32.mrf.mxu1  ;;  %v1779_v58 = vadd.f32 %v1778_v37, %v1736_v53  ;;  %v1820_v59 = vadd.f32 %v1819_v34, %v1777_v52  ;;  %v2048_v37 = vrot.slane %v2043_v36, %v3327_v30 }
 0x166   :  { %v1822_v1 = vadd.f32 %v1821_v38, %v1779_v58  ;;  %v2052_v38 = vrot.slane %v2043_v36, %v3329_v31 }
 0x19d   :  { %v1858_v41 = vpop.f32.mrf.mxu0 }
 0x19e   :  { %v1901_v42 = vpop.f32.mrf.mxu1  ;;  %v1859_v60 = vadd.f32 %v1858_v41, %v1816_v56 }
 0x19f   :  { %v1860_v47 = vpop.f32.mrf.mxu0 }
 0x1a0   :  { %v1903_v48 = vpop.f32.mrf.mxu1  ;;  %v1861_v61 = vadd.f32 %v1860_v47, %v1818_v57  ;;  %v1902_v4 = vadd.f32 %v1901_v42, %v1859_v60  ;;  %v2271_v42 = vld [vmem:[%s3358_s6] sm:$0x3] }
 0x1a1   :  { %v1862_v54 = vpop.f32.mrf.mxu0  ;;  %v2276_v47 = vrot.slane %v2271_v42, %v3327_v30 }
 0x1a2   :  { %v1905_v55 = vpop.f32.mrf.mxu1  ;;  %v1863_v0 = vadd.f32 %v1862_v54, %v1820_v59  ;;  %v1904_v5 = vadd.f32 %v1903_v48, %v1861_v61  ;;  %v2280_v48 = vrot.slane %v2271_v42, %v3329_v31 }
 0x1a3   :  { %v1864_v62 = vpop.f32.mrf.mxu0 }
 0x1a4   :  { %v1907_v63 = vpop.f32.mrf.mxu1  ;;  %v1865_v6 = vadd.f32 %v1864_v62, %v1822_v1  ;;  %v1906_v9 = vadd.f32 %v1905_v55, %v1863_v0 }
 0x1a6   :  { %v1908_v15 = vadd.f32 %v1907_v63, %v1865_v6  ;;  %v2293_v63 = vstv %s2316_s5 }
 0x1dd   :  { %v1944_v2 = vpop.f32.mrf.mxu0 }
 0x1de   :  { %v1987_v3 = vpop.f32.mrf.mxu1  ;;  %v1945_v10 = vadd.f32 %v1944_v2, %v1902_v4 }
 0x1df   :  { %v1946_v7 = vpop.f32.mrf.mxu0 }
 0x1e0   :  { %v1989_v8 = vpop.f32.mrf.mxu1  ;;  %v1947_v11 = vadd.f32 %v1946_v7, %v1904_v5  ;;  %v1988_v18 = vadd.f32 %v1987_v3, %v1945_v10 }
 0x1e1   :  { %v1948_v12 = vpop.f32.mrf.mxu0 }
 0x1e2   :  { %v1949_v13 = vadd.f32 %v1948_v12, %v1906_v9  ;;  %v1991_v14 = vpop.f32.mrf.mxu1  ;;  %v1990_v16 = vadd.f32 %v1989_v8, %v1947_v11  ;;  %v2001_v26 = vmul.f32 %v2000_v20, %v1988_v18  ;;  %vm1996_vm2 = vcmp.ge.f32.partialorder %v1988_v18, 0.0 }
 0x1e3   :  { %v1950_v17 = vpop.f32.mrf.mxu0 }
 0x1e4   :  { %v1992_v19 = vadd.f32 %v1991_v14, %v1949_v13  ;;  %v1951_v21 = vadd.f32 %v1950_v17, %v1908_v15  ;;  %v1993_v23 = vpop.f32.mrf.mxu1  ;;  %v2002_v24 = vmul.f32 %v2000_v20, %v1990_v16  ;;  %vm1997_vm1 = vcmp.ge.f32.partialorder %v1990_v16, 0.0 }
 0x1e5   :  { %v2005_v33 = vsel %vm1996_vm2, %v1988_v18, %v2001_v26 }
 0x1e6   :  { %v2003_v22 = vmul.f32 %v2000_v20, %v1992_v19  ;;  %vm1998_vm0 = vcmp.ge.f32.partialorder %v1992_v19, 0.0  ;;  %v1994_v25 = vadd.f32 %v1993_v23, %v1951_v21  ;;  %v2006_v29 = vsel %vm1997_vm1, %v1990_v16, %v2002_v24 }
 0x1e8   :  { %vm1999_vm3 = vcmp.ge.f32.partialorder %v1994_v25, 0.0  ;;  %v2004_v27 = vmul.f32 %v2000_v20, %v1994_v25  ;;  %v2007_v28 = vsel %vm1998_vm0, %v1992_v19, %v2003_v22 }
 0x1e9   :  { %v2009_v35 = vpack.c.bf16 %v2007_v28, %v2005_v33 }
 0x1ea   :  { %v2008_v32 = vsel %vm1999_vm3, %v1994_v25, %v2004_v27 }
 0x1eb   :  { %v2010_v34 = vpack.c.bf16 %v2008_v32, %v2006_v29 }
 0x1ed   :  { %2247 = vmatprep.mubr.bf16.mxu0 %v2010_v34 }
 0x1ee   :  { %2248 = vmatmul.mubr.bf16.vlgmr.msra.gmra.mxu0 %v2009_v35 }
 0x2ae   :  { %v2249_v39 = vpop.f32.mrf.mxu0 }
 0x2af   :  { %v2250_v41 = vadd.f32 %v2249_v39, %v2048_v37 }
 0x2b0   :  { %v2251_v43 = vpop.f32.mrf.mxu0 }
 0x2b1   :  { %vm2258_vm4 = vcmp.ge.f32.partialorder %v2250_v41, 0.0  ;;  %v2263_v44 = vmul.f32 %v2262_v40, %v2250_v41  ;;  %v2252_v45 = vadd.f32 %v2251_v43, %v2052_v38 }
 0x2b2   :  { %v2253_v46 = vpop.f32.mrf.mxu0 }
 0x2b3   :  { %vm2259_vm5 = vcmp.ge.f32.partialorder %v2252_v45, 0.0  ;;  %v2264_v49 = vmul.f32 %v2262_v40, %v2252_v45  ;;  %v2254_v50 = vadd.f32 %v2253_v46, %v2048_v37  ;;  %v2267_v51 = vsel %vm2258_vm4, %v2250_v41, %v2263_v44 }
 0x2b4   :  { %v2255_v52 = vpop.f32.mrf.mxu0  ;;  %v2283_v56 = vmul.f32 %v2276_v47, %v2267_v51 }
 0x2b5   :  { %vm2260_vm6 = vcmp.ge.f32.partialorder %v2254_v50, 0.0  ;;  %v2265_v53 = vmul.f32 %v2262_v40, %v2254_v50  ;;  %v2256_v54 = vadd.f32 %v2255_v52, %v2052_v38  ;;  %v2268_v55 = vsel %vm2259_vm5, %v2252_v45, %v2264_v49 }
 0x2b6   :  { %v2284_v57 = vmul.f32 %v2280_v48, %v2268_v55 }
 0x2b7   :  { %vm2261_vm7 = vcmp.ge.f32.partialorder %v2256_v54, 0.0  ;;  %v2266_v58 = vmul.f32 %v2262_v40, %v2256_v54  ;;  %v2269_v59 = vsel %vm2260_vm6, %v2254_v50, %v2265_v53 }
 0x2b8   :  { %v2287_v60 = vadd.f32 %v2284_v57, %v2283_v56  ;;  %v2285_v30 = vmul.f32 %v2276_v47, %v2269_v59 }
 0x2b9   :  { %v2270_v61 = vsel %vm2261_vm7, %v2256_v54, %v2266_v58 }
 0x2ba   :  { %2288 = vadd.xlane.f32.xlu0 %v2287_v60  ;;  %v2286_v62 = vmul.f32 %v2280_v48, %v2270_v61 }
 0x2bc   :  { %v2290_v31 = vadd.f32 %v2286_v62, %v2285_v30 }
 0x2be   :  { %2291 = vadd.xlane.f32.xlu0 %v2290_v31 }
 0x343   :  { %v2289_v0 = vpop.xlane.xlu0 %2288 }
 0x344   :  { %v2294_v1 = vadd.f32 %v2293_v63, %v2289_v0 }
 0x346   :  { %v2296_v2 = vsub.f32 0.0, %v2294_v1 }
 0x347   :  { %v2292_v3 = vpop.xlane.xlu0 %2291 }
 0x348   :  { %v2298_v4 = vmul.f32 1.442695, %v2296_v2  ;;  %v2295_v5 = vadd.f32 %v2293_v63, %v2292_v3 }
 0x34a   :  { %3041 = vpow2.f32 %v2298_v4  ;;  %v2297_v6 = vsub.f32 0.0, %v2295_v5 }
 0x34c   :  { %v2300_v7 = vmul.f32 1.442695, %v2297_v6 }
 0x34e   :  { %3043 = vpow2.f32 %v2300_v7 }
 0x357   :  { %v3042_v8 = vpop.eup %3041 }
 0x358   :  { %v2302_v9 = vadd.f32 1.0, %v3042_v8 }
 0x35a   :  { %3045 = vrcp.f32 %v2302_v9 }
 0x35b   :  { %v3044_v10 = vpop.eup %3043 }
 0x35c   :  { %v2303_v11 = vadd.f32 1.0, %v3044_v10 }
 0x35e   :  { %3047 = vrcp.f32 %v2303_v11 }
 0x367   :  { %v3046_v12 = vpop.eup %3045 }
 0x368   :  { %2307 = vst.msk [vmem:[%s3359_s7] sm:$0xff] %vm2306_vm8, %v3046_v12 }
 0x36b   :  { %v3048_v13 = vpop.eup %3047 }
 0x36c   :  { %2308 = vst.msk [vmem:[%s3359_s7 + $0x8] sm:$0xff] %vm2306_vm8, %v3048_v13 }
 0x36d   :  { %2313 = vsyncpa [#allocation3], 1 }
 0x36e   :  { %2314 = vsyncpa [#allocation4], 1 }

</bundles_post_ra>
